<compile_context>
chip_gen: v7x
topology: tpu7x:2x2x1
jax: 0.10.0
libtpu: 0.0.40
codegen_flags: <defaults>
</compile_context>

<pallas_src>
import functools

import jax
import jax.numpy as jnp
from jax.experimental import pallas as pl
from jax.experimental.pallas import tpu as pltpu


def _round_up(x, m):
    return ((x + m - 1) // m) * m


def mlp_head_kernel(x_ref, w1_ref, b1_ref, w2_ref, b2_ref, w3_ref, b3_ref,
                    o_ref, acc_ref, *, feats_resident):
    """K-tiled fused head: Linear(D,512)->ReLU->Linear(512,256)->ReLU->Linear(256,n_out).

    Grid axis 0 tiles the feature (K) dim of the first matmul. acc_ref holds
    the f32 partial sums of layer 1; layers 2/3 run once on the last K step.
    Dropout layers are identity (eval mode).
    """
    k = pl.program_id(0)

    @pl.when(k == 0)
    def _():
        acc_ref[...] = jnp.zeros_like(acc_ref)

    # Layer 1 partial: [B, tk] @ [tk, 512], accumulated in f32.
    x_chunk = x_ref[k] if feats_resident else x_ref[...]
    acc_ref[...] += jnp.dot(x_chunk, w1_ref[...],
                            preferred_element_type=jnp.float32)

    @pl.when(k == pl.num_programs(0) - 1)
    def _():
        h1 = jnp.maximum(acc_ref[...] + b1_ref[...], 0.0)             # f32 ReLU
        h2 = jnp.dot(h1.astype(jnp.bfloat16), w2_ref[...],
                     preferred_element_type=jnp.float32) + b2_ref[...]
        h2 = jnp.maximum(h2, 0.0)                                      # f32 ReLU
        o_ref[...] = (jnp.dot(h2.astype(jnp.bfloat16), w3_ref[...],
                              preferred_element_type=jnp.float32)
                      + b3_ref[...]).astype(o_ref.dtype)


def prepare_params(params, *, tk=4096):
    """One-time weight prep: bf16 cast + K / lane zero-padding.

    Hoisted out of the per-call path so f32 weights are not re-read / re-written
    on every forward (the review's biggest bandwidth leak).
    """
    w1, b1, w2, b2, w3, b3 = params
    D, H1 = w1.shape
    H2 = w2.shape[1]
    n_out = w3.shape[1]

    tk = _round_up(max(128, min(tk, D)), 128)     # multiple of 128 lanes
    d_pad = _round_up(D, tk)
    n_out_pad = _round_up(n_out, 128)             # lane-dense output store

    w1_p = jnp.zeros((d_pad, H1), jnp.bfloat16).at[:D, :].set(
        w1.astype(jnp.bfloat16))
    w2_b = w2.astype(jnp.bfloat16)
    w3_p = jnp.zeros((H2, n_out_pad), jnp.bfloat16).at[:, :n_out].set(
        w3.astype(jnp.bfloat16))
    b3_p = jnp.zeros((1, n_out_pad), jnp.float32).at[:, :n_out].set(b3)

    return dict(w1=w1_p, b1=b1, w2=w2_b, b2=b2, w3=w3_p, b3=b3_p,
                D=D, d_pad=d_pad, tk=tk,
                H1=H1, H2=H2, n_out=n_out, n_out_pad=n_out_pad)


def pretrained_model_forward(x_nchw, prepared):
    """x_nchw: [B, C, H, W] float32. Returns [B, n_outputs] float32."""
    B = x_nchw.shape[0]
    D, d_pad, tk = prepared["D"], prepared["d_pad"], prepared["tk"]
    H1, H2 = prepared["H1"], prepared["H2"]
    n_out, n_out_pad = prepared["n_out"], prepared["n_out_pad"]
    ksteps = d_pad // tk

    # Backbone stub + nn.Flatten(); cast activations to bf16 (MXU operand).
    feats = x_nchw.reshape(B, -1).astype(jnp.bfloat16)
    if d_pad != D:
        feats = jnp.pad(feats, ((0, 0), (0, d_pad - D)))

    # Features are tiny for small B: keep them fully VMEM-resident and index
    # with x_ref[k] (no per-step feature DMA / semaphore wait). Fall back to
    # streaming (B, tk) blocks if the batch ever makes them large.
    feats_resident = B * d_pad * 2 <= (4 << 20)
    if feats_resident:
        x_arg = feats.reshape(B, ksteps, tk).transpose(1, 0, 2)
        x_spec = pl.BlockSpec((ksteps, B, tk), lambda k: (0, 0, 0))
    else:
        x_arg = feats
        x_spec = pl.BlockSpec((B, tk), lambda k: (0, k))

    # Advisory cost so XLA can overlap this memory-bound call with neighbors.
    flops = 2 * B * (d_pad * H1 + H1 * H2 + H2 * n_out_pad)
    bytes_accessed = (B * d_pad * 2 + d_pad * H1 * 2 + H1 * H2 * 2
                      + H2 * n_out_pad * 2
                      + (H1 + H2 + n_out_pad) * 4 + B * n_out_pad * 4)
    cost = pl.CostEstimate(flops=flops, transcendentals=0,
                           bytes_accessed=bytes_accessed)

    out = pl.pallas_call(
        functools.partial(mlp_head_kernel, feats_resident=feats_resident),
        out_shape=jax.ShapeDtypeStruct((B, n_out_pad), jnp.float32),
        grid_spec=pltpu.PrefetchScalarGridSpec(
            num_scalar_prefetch=0,
            grid=(ksteps,),
            in_specs=[
                x_spec,                                            # feats (resident)
                pl.BlockSpec((tk, H1), lambda k: (k, 0)),          # W1 K-chunk (streamed)
                pl.BlockSpec((1, H1), lambda k: (0, 0)),           # b1 (resident)
                pl.BlockSpec((H1, H2), lambda k: (0, 0)),          # W2 (resident)
                pl.BlockSpec((1, H2), lambda k: (0, 0)),           # b2 (resident)
                pl.BlockSpec((H2, n_out_pad), lambda k: (0, 0)),   # W3 (resident)
                pl.BlockSpec((1, n_out_pad), lambda k: (0, 0)),    # b3 (resident)
            ],
            out_specs=pl.BlockSpec((B, n_out_pad), lambda k: (0, 0)),
            scratch_shapes=[pltpu.VMEM((B, H1), jnp.float32)],     # layer-1 f32 acc
        ),
        compiler_params=pltpu.CompilerParams(
            dimension_semantics=("arbitrary",),     # K is a reduction axis
            vmem_limit_bytes=48 << 20,              # under v7x's 64 MiB physical
        ),
        cost_estimate=cost,
    )(x_arg, prepared["w1"], prepared["b1"], prepared["w2"], prepared["b2"],
      prepared["w3"], prepared["b3"])

    return out[:, :n_out]


def init_params(key, last_dimension, n_outputs):
    """Deterministic PyTorch-style Linear init. Weights stored [in, out]."""
    ks = jax.random.split(key, 6)

    def lin(kw, kb, fan_in, fan_out):
        bound = 1.0 / jnp.sqrt(fan_in)
        w = jax.random.uniform(kw, (fan_in, fan_out), jnp.float32, -bound, bound)
        b = jax.random.uniform(kb, (1, fan_out), jnp.float32, -bound, bound)
        return w, b

    w1, b1 = lin(ks[0], ks[1], last_dimension, 512)
    w2, b2 = lin(ks[2], ks[3], 512, 256)
    w3, b3 = lin(ks[4], ks[5], 256, n_outputs)
    return (w1, b1, w2, b2, w3, b3)


def _reference_forward(x_nchw, params):
    """Pure-JAX f32 reference of the head (loose bf16 tolerance check)."""
    B = x_nchw.shape[0]
    feats = x_nchw.reshape(B, -1)
    w1, b1, w2, b2, w3, b3 = params
    h1 = jnp.maximum(feats @ w1 + b1, 0.0)
    h2 = jnp.maximum(h1 @ w2 + b2, 0.0)
    return h2 @ w3 + b3


if __name__ == "__main__":
    key = jax.random.PRNGKey(0)
    k_x, k_p = jax.random.split(key)

    B, C, H, W = 2, 4, 16, 16            # small NCHW input
    n_outputs = 10
    last_dimension = C * H * W           # 1024 (backbone stub = flatten)

    x = jax.random.normal(k_x, (B, C, H, W), jnp.float32)
    params = init_params(k_p, last_dimension, n_outputs)

    prepared = prepare_params(params)    # one-time cast/pad, hoisted off hot path
    y = pretrained_model_forward(x, prepared)
    jax.block_until_ready(y)

    assert y.shape == (B, n_outputs) and y.dtype == jnp.float32
    assert bool(jnp.all(jnp.isfinite(y)))
    y_ref = _reference_forward(x, params)
    assert bool(jnp.allclose(y, y_ref, atol=5e-2, rtol=5e-2)), "mismatch vs f32 reference"
    print("KERNEL_OK")
</pallas_src>

<mosaic_0001>
module attributes {stable_mosaic.version = 11 : i64} {
  func.func @mlp_head_kernel(%arg0: i32, %arg1: memref<1x2x1024xbf16, #tpu.memory_space<vmem>>, %arg2: memref<1024x512xbf16, #tpu.memory_space<vmem>>, %arg3: memref<1x512xf32, #tpu.memory_space<vmem>>, %arg4: memref<512x256xbf16, #tpu.memory_space<vmem>>, %arg5: memref<1x256xf32, #tpu.memory_space<vmem>>, %arg6: memref<256x128xbf16, #tpu.memory_space<vmem>>, %arg7: memref<1x128xf32, #tpu.memory_space<vmem>>, %arg8: memref<2x128xf32, #tpu.memory_space<vmem>>, %arg9: memref<2x512xf32, #tpu.memory_space<vmem>>) attributes {dimension_semantics = [#tpu.dimension_semantics<arbitrary>], iteration_bounds = array<i64: 1>, scalar_prefetch = 0 : i64, scratch_operands = 1 : i64, tpu.core_type = #tpu.core_type<tc>, window_params = [{pipeline_mode = #tpu.pipeline_mode<synchronous>, transform_indices = @transform_0, window_bounds = array<i64: 1, 2, 1024>}, {transform_indices = @transform_1, window_bounds = array<i64: 1024, 512>}, {pipeline_mode = #tpu.pipeline_mode<synchronous>, transform_indices = @transform_2, window_bounds = array<i64: 1, 512>}, {pipeline_mode = #tpu.pipeline_mode<synchronous>, transform_indices = @transform_3, window_bounds = array<i64: 512, 256>}, {pipeline_mode = #tpu.pipeline_mode<synchronous>, transform_indices = @transform_4, window_bounds = array<i64: 1, 256>}, {pipeline_mode = #tpu.pipeline_mode<synchronous>, transform_indices = @transform_5, window_bounds = array<i64: 256, 128>}, {pipeline_mode = #tpu.pipeline_mode<synchronous>, transform_indices = @transform_6, window_bounds = array<i64: 1, 128>}, {pipeline_mode = #tpu.pipeline_mode<synchronous>, transform_indices = @transform_7, window_bounds = array<i64: 2, 128>}]} {
    %c0_i32 = arith.constant 0 : i32
    %0 = arith.cmpi eq, %arg0, %c0_i32 : i32
    %1 = arith.extui %0 : i1 to i32
    %c0_i32_0 = arith.constant 0 : i32
    %2 = arith.cmpi ne, %1, %c0_i32_0 : i32
    scf.if %2 {
      %cst_10 = arith.constant 0.000000e+00 : f32
      %14 = vector.broadcast %cst_10 : f32 to vector<2x512xf32>
      %c0_11 = arith.constant 0 : index
      %c0_12 = arith.constant 0 : index
      %15 = vector.load %arg9[%c0_11, %c0_12] : memref<2x512xf32, #tpu.memory_space<vmem>>, vector<2x512xf32>
      tpu.vector_store %arg9[%c0_11, %c0_12], %14 {strides = array<i32>} : memref<2x512xf32, #tpu.memory_space<vmem>>, vector<2x512xf32>,
    } else {
    }
    %3 = arith.index_cast %arg0 : i32 to index
    %c0 = arith.constant 0 : index
    %c0_1 = arith.constant 0 : index
    %4 = vector.load %arg1[%3, %c0, %c0_1] : memref<1x2x1024xbf16, #tpu.memory_space<vmem>>, vector<1x2x1024xbf16>
    %5 = vector.shape_cast %4 : vector<1x2x1024xbf16> to vector<2x1024xbf16>
    %c0_2 = arith.constant 0 : index
    %c0_3 = arith.constant 0 : index
    %6 = vector.load %arg9[%c0_2, %c0_3] : memref<2x512xf32, #tpu.memory_space<vmem>>, vector<2x512xf32>
    %c0_4 = arith.constant 0 : index
    %c0_5 = arith.constant 0 : index
    %7 = vector.load %arg2[%c0_4, %c0_5] : memref<1024x512xbf16, #tpu.memory_space<vmem>>, vector<1024x512xbf16>
    %cst = arith.constant dense<0.000000e+00> : vector<2x512xf32>
    %8 = tpu.matmul %5, %7, %cst {dimension_numbers = #tpu.dot_dimension_numbers<[1], [0], [0], [1], [0, 0, 1, 1], [], []>} : vector<2x1024xbf16>, vector<1024x512xbf16>, vector<2x512xf32> -> vector<2x512xf32>
    %9 = arith.addf %6, %8 : vector<2x512xf32>
    %c0_6 = arith.constant 0 : index
    %c0_7 = arith.constant 0 : index
    %10 = vector.load %arg9[%c0_6, %c0_7] : memref<2x512xf32, #tpu.memory_space<vmem>>, vector<2x512xf32>
    tpu.vector_store %arg9[%c0_6, %c0_7], %9 {strides = array<i32>} : memref<2x512xf32, #tpu.memory_space<vmem>>, vector<2x512xf32>,
    %c0_i32_8 = arith.constant 0 : i32
    %11 = arith.cmpi eq, %arg0, %c0_i32_8 : i32
    %12 = arith.extui %11 : i1 to i32
    %c0_i32_9 = arith.constant 0 : i32
    %13 = arith.cmpi ne, %12, %c0_i32_9 : i32
    scf.if %13 {
      %c0_10 = arith.constant 0 : index
      %c0_11 = arith.constant 0 : index
      %14 = vector.load %arg9[%c0_10, %c0_11] : memref<2x512xf32, #tpu.memory_space<vmem>>, vector<2x512xf32>
      %c0_12 = arith.constant 0 : index
      %c0_13 = arith.constant 0 : index
      %15 = vector.load %arg3[%c0_12, %c0_13] : memref<1x512xf32, #tpu.memory_space<vmem>>, vector<1x512xf32>
      %16 = vector.broadcast %15 : vector<1x512xf32> to vector<2x512xf32>
      %17 = arith.addf %14, %16 : vector<2x512xf32>
      %cst_14 = arith.constant 0.000000e+00 : f32
      %18 = vector.broadcast %cst_14 : f32 to vector<2x512xf32>
      %19 = arith.maximumf %17, %18 : vector<2x512xf32>
      %20 = arith.truncf %19 : vector<2x512xf32> to vector<2x512xbf16>
      %c0_15 = arith.constant 0 : index
      %c0_16 = arith.constant 0 : index
      %21 = vector.load %arg4[%c0_15, %c0_16] : memref<512x256xbf16, #tpu.memory_space<vmem>>, vector<512x256xbf16>
      %cst_17 = arith.constant dense<0.000000e+00> : vector<2x256xf32>
      %22 = tpu.matmul %20, %21, %cst_17 {dimension_numbers = #tpu.dot_dimension_numbers<[1], [0], [0], [1], [0, 0, 1, 1], [], []>} : vector<2x512xbf16>, vector<512x256xbf16>, vector<2x256xf32> -> vector<2x256xf32>
      %c0_18 = arith.constant 0 : index
      %c0_19 = arith.constant 0 : index
      %23 = vector.load %arg5[%c0_18, %c0_19] : memref<1x256xf32, #tpu.memory_space<vmem>>, vector<1x256xf32>
      %24 = vector.broadcast %23 : vector<1x256xf32> to vector<2x256xf32>
      %25 = arith.addf %22, %24 : vector<2x256xf32>
      %cst_20 = arith.constant 0.000000e+00 : f32
      %26 = vector.broadcast %cst_20 : f32 to vector<2x256xf32>
      %27 = arith.maximumf %25, %26 : vector<2x256xf32>
      %28 = arith.truncf %27 : vector<2x256xf32> to vector<2x256xbf16>
      %c0_21 = arith.constant 0 : index
      %c0_22 = arith.constant 0 : index
      %29 = vector.load %arg6[%c0_21, %c0_22] : memref<256x128xbf16, #tpu.memory_space<vmem>>, vector<256x128xbf16>
      %cst_23 = arith.constant dense<0.000000e+00> : vector<2x128xf32>
      %30 = tpu.matmul %28, %29, %cst_23 {dimension_numbers = #tpu.dot_dimension_numbers<[1], [0], [0], [1], [0, 0, 1, 1], [], []>} : vector<2x256xbf16>, vector<256x128xbf16>, vector<2x128xf32> -> vector<2x128xf32>
      %c0_24 = arith.constant 0 : index
      %c0_25 = arith.constant 0 : index
      %31 = vector.load %arg7[%c0_24, %c0_25] : memref<1x128xf32, #tpu.memory_space<vmem>>, vector<1x128xf32>
      %32 = vector.broadcast %31 : vector<1x128xf32> to vector<2x128xf32>
      %33 = arith.addf %30, %32 : vector<2x128xf32>
      %c0_26 = arith.constant 0 : index
      %c0_27 = arith.constant 0 : index
      %34 = vector.load %arg8[%c0_26, %c0_27] : memref<2x128xf32, #tpu.memory_space<vmem>>, vector<2x128xf32>
      tpu.vector_store %arg8[%c0_26, %c0_27], %33 {strides = array<i32>} : memref<2x128xf32, #tpu.memory_space<vmem>>, vector<2x128xf32>,
    } else {
    }
    return
  }
  func.func @transform_0(%arg0: i32) -> (i32, i32, i32) {
    %c0_i32 = arith.constant 0 : i32
    %c0_i32_0 = arith.constant 0 : i32
    %c0_i32_1 = arith.constant 0 : i32
    %c0_i32_2 = arith.constant 0 : i32
    return %c0_i32, %c0_i32_0, %c0_i32_1 : i32, i32, i32
  }
  func.func @transform_1(%arg0: i32) -> (i32, i32) {
    %c0_i32 = arith.constant 0 : i32
    %c0_i32_0 = arith.constant 0 : i32
    return %arg0, %c0_i32 : i32, i32
  }
  func.func @transform_2(%arg0: i32) -> (i32, i32) {
    %c0_i32 = arith.constant 0 : i32
    %c0_i32_0 = arith.constant 0 : i32
    %c0_i32_1 = arith.constant 0 : i32
    return %c0_i32, %c0_i32_0 : i32, i32
  }
  func.func @transform_3(%arg0: i32) -> (i32, i32) {
    %c0_i32 = arith.constant 0 : i32
    %c0_i32_0 = arith.constant 0 : i32
    %c0_i32_1 = arith.constant 0 : i32
    return %c0_i32, %c0_i32_0 : i32, i32
  }
  func.func @transform_4(%arg0: i32) -> (i32, i32) {
    %c0_i32 = arith.constant 0 : i32
    %c0_i32_0 = arith.constant 0 : i32
    %c0_i32_1 = arith.constant 0 : i32
    return %c0_i32, %c0_i32_0 : i32, i32
  }
  func.func @transform_5(%arg0: i32) -> (i32, i32) {
    %c0_i32 = arith.constant 0 : i32
    %c0_i32_0 = arith.constant 0 : i32
    %c0_i32_1 = arith.constant 0 : i32
    return %c0_i32, %c0_i32_0 : i32, i32
  }
  func.func @transform_6(%arg0: i32) -> (i32, i32) {
    %c0_i32 = arith.constant 0 : i32
    %c0_i32_0 = arith.constant 0 : i32
    %c0_i32_1 = arith.constant 0 : i32
    return %c0_i32, %c0_i32_0 : i32, i32
  }
  func.func @transform_7(%arg0: i32) -> (i32, i32) {
    %c0_i32 = arith.constant 0 : i32
    %c0_i32_0 = arith.constant 0 : i32
    %c0_i32_1 = arith.constant 0 : i32
    return %c0_i32, %c0_i32_0 : i32, i32
  }
}

</mosaic_0001>

<bundles_post_ra>
// kernel: tpu_custom_call.1
= control target key start
LH: loop header
LB: loop body
LE: loop exit
PB: predicated region body
PF: predicated region fallthrough
CT: control target
= control target key end

     0   :  { %12 = vsyncpa [#allocation4], 0  ;;  %s3992_s0 = inlined_call_operand.hbm [shape: bf16[1,2,1024], index: 0, kind: input, shape index: {}]   ;;  %s3993_s1 = inlined_call_operand.hbm [shape: bf16[1024,512], index: 1, kind: input, shape index: {}]   ;;  %s3994_s2 = inlined_call_operand.vmem [shape: f32[1,512], index: 2, kind: input, shape index: {}]   ;;  %s3995_s3 = inlined_call_operand.hbm [shape: bf16[512,256], index: 3, kind: input, shape index: {}]   ;;  %s3996_s4 = inlined_call_operand.vmem [shape: f32[1,256], index: 4, kind: input, shape index: {}]   ;;  %s3997_s5 = inlined_call_operand.hbm [shape: bf16[256,128], index: 5, kind: input, shape index: {}]   ;;  %s3998_s6 = inlined_call_operand.vmem [shape: f32[1,128], index: 6, kind: input, shape index: {}]   ;;  %s3999_s7 = inlined_call_operand.hbm [shape: f32[2,128], index: 7, kind: output, shape index: {}]  }
   0x1   :  { %13 = vsyncpa [#allocation7], 0 }
   0x2   :  { %14 = vsyncpa [#allocation10], 0 }
   0x3   :  { %15 = vsyncpa [#allocation5], 0  ;;  %s3794_s24 = smov [#allocation6]   ;;  %s3676_s28 = scalar_lea.hbm %s3993_s1, 32768 }
   0x4   :  { %s31_s25 = sshll.u32 %s3794_s24, 4  ;;  %p3677_p0 = scmp.ne.s32.totalorder %s3993_s1, %s3676_s28  ;;  %s32_s25 = int_to_ptr.vmem [resolvable:$true] %s31_s25 }
   0x5   :  { %p3680_p1 = scmp.lt.u32.totalorder %s3676_s28, %s3993_s1 }
   0x7   :  { %p3682_p2 = pnand %p3680_p1, %p3677_p0 }
   0x9   :  { %3685 = shalt.err (!%p3682_p2)
}
   0xa   :  { %s3686_s10 = scalar_lea.vmem %s32_s25, 32768  ;;  %p3691_p4 = scmp.lt.s32.totalorder %s32_s25, %s32_s25 }
   0xb   :  { %p3687_p3 = scmp.ne.s32.totalorder %s32_s25, %s3686_s10  ;;  %p3692_p5 = scmp.lt.s32.totalorder %s3686_s10, %s3686_s10 }
   0xd   :  { %p3693_p6 = por %p3692_p5, %p3691_p4 }
   0xf   :  { %p3694_p7 = pnand %p3693_p6, %p3687_p3 }
  0x11   :  { %3697 = shalt.err (!%p3694_p7)
}
  0x12   :  { %s3795_s11 = smov 256   ;;  %s3796_s12 = smov 16  }
  0x13   :  { %37 = dma.hbm_to_vmem [thread:$0]  %s3993_s1, 32768, %s32_s25, [#allocation7], %s3795_s11, %s3795_s11, %s3796_s12  }
  0x14   :  { %s3797_s15 = smov [#allocation3]   ;;  %s3798_s17 = smov [#allocation8]  }
  0x15   :  { %s22_s16 = sshll.u32 %s3797_s15, 4  ;;  %s45_s18 = sshll.u32 %s3798_s17, 4  ;;  %s23_s16 = int_to_ptr.vmem [resolvable:$true] %s22_s16  ;;  %s46_s18 = int_to_ptr.vmem [resolvable:$true] %s45_s18 }
  0x16   :  { %s3698_s21 = scalar_lea.hbm %s3992_s0, 128 }
  0x17   :  { %p3699_p8 = scmp.ne.s32.totalorder %s3992_s0, %s3698_s21  ;;  %p3702_p9 = scmp.lt.u32.totalorder %s3698_s21, %s3992_s0 }
  0x19   :  { %p3704_p10 = pnand %p3702_p9, %p3699_p8 }
  0x1b   :  { %3707 = shalt.err (!%p3704_p10)
}
  0x1c   :  { %s3708_s1 = scalar_lea.vmem %s23_s16, 128  ;;  %p3713_p12 = scmp.lt.s32.totalorder %s23_s16, %s23_s16 }
  0x1d   :  { %p3709_p11 = scmp.ne.s32.totalorder %s23_s16, %s3708_s1  ;;  %p3714_p13 = scmp.lt.s32.totalorder %s3708_s1, %s3708_s1 }
  0x1f   :  { %p3715_p0 = por %p3714_p13, %p3713_p12 }
  0x21   :  { %p3716_p1 = pnand %p3715_p0, %p3709_p11 }
  0x23   :  { %3719 = shalt.err (!%p3716_p1)
}
  0x24   :  { %25 = dma.hbm_to_vmem [thread:$0]  %s3992_s0, 128, %s23_s16, [#allocation4]  }
  0x25   :  { %s3720_s30 = scalar_lea.hbm %s3995_s3, 8192 }
  0x26   :  { %p3721_p2 = scmp.ne.s32.totalorder %s3995_s3, %s3720_s30  ;;  %p3724_p3 = scmp.lt.u32.totalorder %s3720_s30, %s3995_s3 }
  0x28   :  { %p3726_p4 = pnand %p3724_p3, %p3721_p2 }
  0x2a   :  { %3729 = shalt.err (!%p3726_p4)
}
  0x2b   :  { %s3730_s12 = scalar_lea.vmem %s46_s18, 8192  ;;  %p3735_p6 = scmp.lt.s32.totalorder %s46_s18, %s46_s18 }
  0x2c   :  { %p3731_p5 = scmp.ne.s32.totalorder %s46_s18, %s3730_s12  ;;  %p3736_p7 = scmp.lt.s32.totalorder %s3730_s12, %s3730_s12 }
  0x2e   :  { %p3737_p8 = por %p3736_p7, %p3735_p6 }
  0x30   :  { %p3738_p9 = pnand %p3737_p8, %p3731_p5 }
  0x32   :  { %3741 = shalt.err (!%p3738_p9)
}
  0x33   :  { %s3799_s0 = smov 128   ;;  %s3800_s13 = smov 8  }
  0x34   :  { %51 = dma.hbm_to_vmem [thread:$0]  %s3995_s3, 8192, %s46_s18, [#allocation7], %s3799_s0, %s3799_s0, %s3800_s13  }
  0x35   :  { %s3801_s16 = smov [#allocation9]   ;;  %s3742_s21 = scalar_lea.hbm %s3997_s5, 2048 }
  0x36   :  { %s59_s17 = sshll.u32 %s3801_s16, 4  ;;  %p3743_p10 = scmp.ne.s32.totalorder %s3997_s5, %s3742_s21  ;;  %s60_s17 = int_to_ptr.vmem [resolvable:$true] %s59_s17 }
  0x37   :  { %p3746_p11 = scmp.lt.u32.totalorder %s3742_s21, %s3997_s5 }
  0x39   :  { %p3748_p12 = pnand %p3746_p11, %p3743_p10 }
  0x3b   :  { %3751 = shalt.err (!%p3748_p12)
}
  0x3c   :  { %s3752_s1 = scalar_lea.vmem %s60_s17, 2048  ;;  %p3757_p0 = scmp.lt.s32.totalorder %s60_s17, %s60_s17 }
  0x3d   :  { %p3753_p13 = scmp.ne.s32.totalorder %s60_s17, %s3752_s1  ;;  %p3758_p1 = scmp.lt.s32.totalorder %s3752_s1, %s3752_s1 }
  0x3f   :  { %p3759_p2 = por %p3758_p1, %p3757_p0 }
  0x41   :  { %p3760_p3 = pnand %p3759_p2, %p3753_p13 }
  0x43   :  { %3763 = shalt.err (!%p3760_p3)
}
  0x44   :  { %s3802_s3 = smov 64   ;;  %s3803_s18 = smov 4  }
  0x45   :  { %65 = dma.hbm_to_vmem [thread:$0]  %s3997_s5, 2048, %s60_s17, [#allocation10], %s3802_s3, %s3802_s3, %s3803_s18  }
  0x46   :  { %3786 = dma.done.wait [#allocation4], 128  }
  0x47   :  { %3787 = vsyncadd [#allocation4], 4294967168 }
  0x48   :  { %3788 = dma.done.wait [#allocation7], 40960  }
  0x49   :  { %3789 = vsyncadd [#allocation7], 4294926336 }
  0x4a   :  { %3790 = dma.done.wait [#allocation10], 2048  }
  0x4b   :  { %3791 = vsyncadd [#allocation10], 4294965248  ;;  %v3179_v0 = vld [vmem:[#allocation6 + $0x4] ss:$16 sps:$4 sm:$0xff]   ;;  %v3183_v2 = vld [vmem:[#allocation6] ss:$16 sps:$4 sm:$0xff]   ;;  %v351_v38 = vlaneseq }
  0x4c   :  { %v3181_v1 = vld [vmem:[#allocation6 + $0x204] ss:$16 sps:$4 sm:$0xff]   ;;  %1684 = vmatprep.subr.bf16.mxu1 %v3179_v0  ;;  %v3184_v3 = vld [vmem:[#allocation6 + $0x200] ss:$16 sps:$4 sm:$0xff]   ;;  %v3804_v36 = vmov 1966171168  }
  0x4d   :  { %1725 = vmatprep.subr.bf16.mxu0 %v3181_v1  ;;  %v3185_v4 = vld [vmem:[#allocation6 + $0x24] ss:$16 sps:$4 sm:$0xff]   ;;  %1685 = vmatpush1.bf16.msra.mxu1 %v3183_v2  ;;  %v3189_v6 = vld [vmem:[#allocation6 + $0x20] ss:$16 sps:$4 sm:$0xff]   ;;  %v349_v37 = vunpack.c.l.s4 %v3804_v36  ;;  %v3895_v43 = vshrl.u32 %v351_v38, 7  ;;  %v88_v52 = vld [vmem:[#allocation3] sm:$0xff] }
  0x4e   :  { %1726 = vmatpush1.bf16.msra.mxu0 %v3184_v3  ;;  %v3187_v5 = vld [vmem:[#allocation6 + $0x224] ss:$16 sps:$4 sm:$0xff]   ;;  %1686 = vmatprep.subr.bf16.mxu1 %v3185_v4  ;;  %v3190_v7 = vld [vmem:[#allocation6 + $0x220] ss:$16 sps:$4 sm:$0xff]   ;;  %v347_v55 = vcombine.high %v88_v52, %v88_v52  ;;  %s3806_s8 = smov [#allocation11]  }
  0x4f   :  { %1727 = vmatprep.subr.bf16.mxu0 %v3187_v5  ;;  %v3191_v8 = vld [vmem:[#allocation6 + $0x44] ss:$16 sps:$4 sm:$0xff]   ;;  %v3195_v10 = vld [vmem:[#allocation6 + $0x40] ss:$16 sps:$4 sm:$0xff]   ;;  %v350_v42 = vunpack.c.0.s8 %v349_v37  ;;  %v3302_v37 = vld [vmem:[#allocation6 + $0x88] ss:$16 sps:$4 sm:$0xff]  }
  0x50   :  { %v3193_v9 = vld [vmem:[#allocation6 + $0x244] ss:$16 sps:$4 sm:$0xff]   ;;  %v3196_v11 = vld [vmem:[#allocation6 + $0x240] ss:$16 sps:$4 sm:$0xff]   ;;  %s2768_s9 = sshll.u32 %s3806_s8, 4  ;;  %s2769_s9 = int_to_ptr.vmem [resolvable:$true] %s2768_s9 }
  0x51   :  { %1687 = vmatpush1.bf16.msra.mxu1 %v3189_v6  ;;  %v3197_v12 = vld [vmem:[#allocation6 + $0x64] ss:$16 sps:$4 sm:$0xff]   ;;  %v3201_v14 = vld [vmem:[#allocation6 + $0x60] ss:$16 sps:$4 sm:$0xff]   ;;  %v3898_v49 = vsub.s32 %v350_v42, %v3895_v43  ;;  %s3764_s10 = scalar_lea.vmem %s2769_s9, 32  ;;  %p3769_p5 = scmp.lt.s32.totalorder %s2769_s9, %s2769_s9 }
  0x52   :  { %1728 = vmatpush1.bf16.msra.mxu0 %v3190_v7  ;;  %1688 = vmatprep.subr.bf16.mxu1 %v3191_v8  ;;  %v3199_v13 = vld [vmem:[#allocation6 + $0x264] ss:$16 sps:$4 sm:$0xff]   ;;  %v3202_v15 = vld [vmem:[#allocation6 + $0x260] ss:$16 sps:$4 sm:$0xff]   ;;  %p3765_p4 = scmp.ne.s32.totalorder %s2769_s9, %s3764_s10  ;;  %p3770_p6 = scmp.lt.s32.totalorder %s3764_s10, %s3764_s10 }
  0x53   :  { %1729 = vmatprep.subr.bf16.mxu0 %v3193_v9  ;;  %v3203_v16 = vld [vmem:[#allocation6 + $0x84] ss:$16 sps:$4 sm:$0xff]   ;;  %v3207_v18 = vld [vmem:[#allocation6 + $0x80] ss:$16 sps:$4 sm:$0xff]   ;;  %v354_v54 = vrot.slane %v88_v52, %v3898_v49  ;;  %v361_v60 = vrot.slane %v347_v55, %v3898_v49  ;;  %v3328_v52 = vld [vmem:[#allocation6 + $0x10c] ss:$16 sps:$4 sm:$0xff]  }
  0x54   :  { %v3205_v17 = vld [vmem:[#allocation6 + $0x284] ss:$16 sps:$4 sm:$0xff]   ;;  %v3208_v19 = vld [vmem:[#allocation6 + $0x280] ss:$16 sps:$4 sm:$0xff]   ;;  %p3771_p7 = por %p3770_p6, %p3769_p5 }
  0x55   :  { %1689 = vmatpush1.bf16.msra.mxu1 %v3195_v10  ;;  %v3209_v20 = vld [vmem:[#allocation6 + $0xa4] ss:$16 sps:$4 sm:$0xff]   ;;  %v3213_v22 = vld [vmem:[#allocation6 + $0xa0] ss:$16 sps:$4 sm:$0xff]   ;;  %v362_v59 = vcombine.high %v354_v54, %v354_v54  ;;  %v3904_v63 = vrot.slane %v361_v60, %v3898_v49 }
  0x56   :  { %1730 = vmatpush1.bf16.msra.mxu0 %v3196_v11  ;;  %1690 = vmatprep.subr.bf16.mxu1 %v3197_v12  ;;  %v3211_v21 = vld [vmem:[#allocation6 + $0x2a4] ss:$16 sps:$4 sm:$0xff]   ;;  %v3214_v23 = vld [vmem:[#allocation6 + $0x2a0] ss:$16 sps:$4 sm:$0xff]   ;;  %p3772_p8 = pnand %p3771_p7, %p3765_p4 }
  0x57   :  { %1731 = vmatprep.subr.bf16.mxu0 %v3199_v13  ;;  %v3215_v24 = vld [vmem:[#allocation6 + $0xc4] ss:$16 sps:$4 sm:$0xff]   ;;  %v3219_v26 = vld [vmem:[#allocation6 + $0xc0] ss:$16 sps:$4 sm:$0xff]   ;;  %v384_v62 = vrot.slane %v362_v59, %v3898_v49  ;;  %v3910_v13 = vrot.slane %v354_v54, %v3898_v49  ;;  %v3326_v54 = vld [vmem:[#allocation6 + $0x108] ss:$16 sps:$4 sm:$0xff]  }
  0x58   :  { %v3217_v25 = vld [vmem:[#allocation6 + $0x2c4] ss:$16 sps:$4 sm:$0xff]   ;;  %v3220_v27 = vld [vmem:[#allocation6 + $0x2c0] ss:$16 sps:$4 sm:$0xff]  }
  0x59   :  { %1691 = vmatpush1.bf16.msra.mxu1 %v3201_v14  ;;  %v3221_v28 = vld [vmem:[#allocation6 + $0xe4] ss:$16 sps:$4 sm:$0xff]   ;;  %v3225_v30 = vld [vmem:[#allocation6 + $0xe0] ss:$16 sps:$4 sm:$0xff]   ;;  %v3906_v3 = vcombine.high %v384_v62, %v384_v62  ;;  %1716 = vmatprep.mubr.bf16.mxu1 %v384_v62 }
  0x5a   :  { %1732 = vmatpush1.bf16.msra.mxu0 %v3202_v15  ;;  %1692 = vmatprep.subr.bf16.mxu1 %v3203_v16  ;;  %v3223_v29 = vld [vmem:[#allocation6 + $0x2e4] ss:$16 sps:$4 sm:$0xff]   ;;  %v3226_v31 = vld [vmem:[#allocation6 + $0x2e0] ss:$16 sps:$4 sm:$0xff]   ;;  %v3280_v16 = vld [vmem:[#allocation6 + $0xc] ss:$16 sps:$4 sm:$0xff]  }
  0x5b   :  { %1733 = vmatprep.subr.bf16.mxu0 %v3205_v17  ;;  %v3227_v32 = vld [vmem:[#allocation6 + $0x104] ss:$16 sps:$4 sm:$0xff]   ;;  %v3231_v34 = vld [vmem:[#allocation6 + $0x100] ss:$16 sps:$4 sm:$0xff]   ;;  %1757 = vmatprep.mubr.bf16.mxu0 %v3906_v3  ;;  %v363_v17 = vcombine.high %v361_v60, %v361_v60  ;;  %v3340_v60 = vld [vmem:[#allocation6 + $0x14c] ss:$16 sps:$4 sm:$0xff]  }
  0x5c   :  { %v3229_v33 = vld [vmem:[#allocation6 + $0x304] ss:$16 sps:$4 sm:$0xff]   ;;  %v3232_v35 = vld [vmem:[#allocation6 + $0x300] ss:$16 sps:$4 sm:$0xff]  }
  0x5d   :  { %1693 = vmatpush1.bf16.msra.mxu1 %v3207_v18  ;;  %v3233_v39 = vld [vmem:[#allocation6 + $0x124] ss:$16 sps:$4 sm:$0xff]   ;;  %v3237_v41 = vld [vmem:[#allocation6 + $0x120] ss:$16 sps:$4 sm:$0xff]  }
  0x5e   :  { %1734 = vmatpush1.bf16.msra.mxu0 %v3208_v19  ;;  %1694 = vmatprep.subr.bf16.mxu1 %v3209_v20  ;;  %v3235_v40 = vld [vmem:[#allocation6 + $0x324] ss:$16 sps:$4 sm:$0xff]   ;;  %v3238_v44 = vld [vmem:[#allocation6 + $0x320] ss:$16 sps:$4 sm:$0xff]   ;;  %v3914_v19 = vcombine.high %v3910_v13, %v3910_v13  ;;  %v3278_v20 = vld [vmem:[#allocation6 + $0x8] ss:$16 sps:$4 sm:$0xff]  }
  0x5f   :  { %1735 = vmatprep.subr.bf16.mxu0 %v3211_v21  ;;  %v3239_v45 = vld [vmem:[#allocation6 + $0x144] ss:$16 sps:$4 sm:$0xff]   ;;  %v3243_v47 = vld [vmem:[#allocation6 + $0x140] ss:$16 sps:$4 sm:$0xff]  }
  0x60   :  { %v3241_v46 = vld [vmem:[#allocation6 + $0x344] ss:$16 sps:$4 sm:$0xff]   ;;  %v3244_v48 = vld [vmem:[#allocation6 + $0x340] ss:$16 sps:$4 sm:$0xff]  }
  0x61   :  { %1695 = vmatpush1.bf16.msra.mxu1 %v3213_v22  ;;  %v3245_v50 = vld [vmem:[#allocation6 + $0x164] ss:$16 sps:$4 sm:$0xff]   ;;  %v3249_v53 = vld [vmem:[#allocation6 + $0x160] ss:$16 sps:$4 sm:$0xff]   ;;  %v3286_v22 = vld [vmem:[#allocation6 + $0x2c] ss:$16 sps:$4 sm:$0xff]  }
  0x62   :  { %1736 = vmatpush1.bf16.msra.mxu0 %v3214_v23  ;;  %1696 = vmatprep.subr.bf16.mxu1 %v3215_v24  ;;  %v3247_v51 = vld [vmem:[#allocation6 + $0x364] ss:$16 sps:$4 sm:$0xff]   ;;  %v3250_v56 = vld [vmem:[#allocation6 + $0x360] ss:$16 sps:$4 sm:$0xff]   ;;  %v3917_v23 = vrot.slane %v363_v17, %v3898_v49  ;;  %v3362_v17 = vld [vmem:[#allocation6 + $0x1c8] ss:$16 sps:$4 sm:$0xff]  }
  0x63   :  { %1737 = vmatprep.subr.bf16.mxu0 %v3217_v25  ;;  %v3251_v57 = vld [vmem:[#allocation6 + $0x184] ss:$16 sps:$4 sm:$0xff]   ;;  %v3255_v61 = vld [vmem:[#allocation6 + $0x180] ss:$16 sps:$4 sm:$0xff]   ;;  %v3284_v25 = vld [vmem:[#allocation6 + $0x28] ss:$16 sps:$4 sm:$0xff]  }
  0x64   :  { %v3253_v58 = vld [vmem:[#allocation6 + $0x384] ss:$16 sps:$4 sm:$0xff]   ;;  %v3256_v0 = vld [vmem:[#allocation6 + $0x380] ss:$16 sps:$4 sm:$0xff]  }
  0x65   :  { %1697 = vmatpush1.bf16.msra.mxu1 %v3219_v26  ;;  %v3257_v1 = vld [vmem:[#allocation6 + $0x1a4] ss:$16 sps:$4 sm:$0xff]   ;;  %v3261_v4 = vld [vmem:[#allocation6 + $0x1a0] ss:$16 sps:$4 sm:$0xff]  }
  0x66   :  { %1738 = vmatpush1.bf16.msra.mxu0 %v3220_v27  ;;  %1698 = vmatprep.subr.bf16.mxu1 %v3221_v28  ;;  %v3259_v2 = vld [vmem:[#allocation6 + $0x3a4] ss:$16 sps:$4 sm:$0xff]   ;;  %v3262_v5 = vld [vmem:[#allocation6 + $0x3a0] ss:$16 sps:$4 sm:$0xff]   ;;  %v3292_v27 = vld [vmem:[#allocation6 + $0x4c] ss:$16 sps:$4 sm:$0xff]  }
  0x67   :  { %1739 = vmatprep.subr.bf16.mxu0 %v3223_v29  ;;  %v3263_v6 = vld [vmem:[#allocation6 + $0x1c4] ss:$16 sps:$4 sm:$0xff]   ;;  %v3267_v8 = vld [vmem:[#allocation6 + $0x1c0] ss:$16 sps:$4 sm:$0xff]   ;;  %v3290_v29 = vld [vmem:[#allocation6 + $0x48] ss:$16 sps:$4 sm:$0xff]  }
  0x68   :  { %v3265_v7 = vld [vmem:[#allocation6 + $0x3c4] ss:$16 sps:$4 sm:$0xff]   ;;  %v3268_v9 = vld [vmem:[#allocation6 + $0x3c0] ss:$16 sps:$4 sm:$0xff]  }
  0x69   :  { %1699 = vmatpush1.bf16.msra.mxu1 %v3225_v30  ;;  %v3269_v10 = vld [vmem:[#allocation6 + $0x1e4] ss:$16 sps:$4 sm:$0xff]   ;;  %v3273_v12 = vld [vmem:[#allocation6 + $0x1e0] ss:$16 sps:$4 sm:$0xff]  }
  0x6a   :  { %1740 = vmatpush1.bf16.msra.mxu0 %v3226_v31  ;;  %1700 = vmatprep.subr.bf16.mxu1 %v3227_v32  ;;  %v3271_v11 = vld [vmem:[#allocation6 + $0x3e4] ss:$16 sps:$4 sm:$0xff]   ;;  %v3274_v14 = vld [vmem:[#allocation6 + $0x3e0] ss:$16 sps:$4 sm:$0xff]   ;;  %v3298_v31 = vld [vmem:[#allocation6 + $0x6c] ss:$16 sps:$4 sm:$0xff]  }
  0x6b   :  { %1741 = vmatprep.subr.bf16.mxu0 %v3229_v33  ;;  %v3277_v15 = vld [vmem:[#allocation6 + $0x404] ss:$16 sps:$4 sm:$0xff]   ;;  %v3275_v18 = vld [vmem:[#allocation6 + $0x400] ss:$16 sps:$4 sm:$0xff]   ;;  %v3296_v33 = vld [vmem:[#allocation6 + $0x68] ss:$16 sps:$4 sm:$0xff]  }
  0x6c   :  { %v3283_v21 = vld [vmem:[#allocation6 + $0x424] ss:$16 sps:$4 sm:$0xff]   ;;  %v3281_v24 = vld [vmem:[#allocation6 + $0x420] ss:$16 sps:$4 sm:$0xff]  }
  0x6d   :  { %1701 = vmatpush1.bf16.msra.mxu1 %v3231_v34  ;;  %v3289_v26 = vld [vmem:[#allocation6 + $0x444] ss:$16 sps:$4 sm:$0xff]   ;;  %v3287_v28 = vld [vmem:[#allocation6 + $0x440] ss:$16 sps:$4 sm:$0xff]  }
  0x6e   :  { %1742 = vmatpush1.bf16.msra.mxu0 %v3232_v35  ;;  %1702 = vmatprep.subr.bf16.mxu1 %v3233_v39  ;;  %v3295_v30 = vld [vmem:[#allocation6 + $0x464] ss:$16 sps:$4 sm:$0xff]   ;;  %v3293_v32 = vld [vmem:[#allocation6 + $0x460] ss:$16 sps:$4 sm:$0xff]   ;;  %v3304_v35 = vld [vmem:[#allocation6 + $0x8c] ss:$16 sps:$4 sm:$0xff]  }
  0x6f   :  { %1743 = vmatprep.subr.bf16.mxu0 %v3235_v40  ;;  %v3301_v34 = vld [vmem:[#allocation6 + $0x484] ss:$16 sps:$4 sm:$0xff]   ;;  %v3299_v36 = vld [vmem:[#allocation6 + $0x480] ss:$16 sps:$4 sm:$0xff]   ;;  %v3310_v39 = vld [vmem:[#allocation6 + $0xac] ss:$16 sps:$4 sm:$0xff]  }
  0x70   :  { %v3307_v38 = vld [vmem:[#allocation6 + $0x4a4] ss:$16 sps:$4 sm:$0xff]   ;;  %v3305_v40 = vld [vmem:[#allocation6 + $0x4a0] ss:$16 sps:$4 sm:$0xff]  }
  0x71   :  { %1703 = vmatpush1.bf16.msra.mxu1 %v3237_v41  ;;  %v3308_v41 = vld [vmem:[#allocation6 + $0xa8] ss:$16 sps:$4 sm:$0xff]   ;;  %v3313_v42 = vld [vmem:[#allocation6 + $0x4c4] ss:$16 sps:$4 sm:$0xff]   ;;  %v3317_v49 = vld [vmem:[#allocation6 + $0x4e0] ss:$16 sps:$4 sm:$0xff]  }
  0x72   :  { %1744 = vmatpush1.bf16.msra.mxu0 %v3238_v44  ;;  %1704 = vmatprep.subr.bf16.mxu1 %v3239_v45  ;;  %v3316_v44 = vld [vmem:[#allocation6 + $0xcc] ss:$16 sps:$4 sm:$0xff]   ;;  %v3311_v45 = vld [vmem:[#allocation6 + $0x4c0] ss:$16 sps:$4 sm:$0xff]   ;;  %v3331_v55 = vld [vmem:[#allocation6 + $0x524] ss:$16 sps:$4 sm:$0xff]  }
  0x73   :  { %1745 = vmatprep.subr.bf16.mxu0 %v3241_v46  ;;  %v3314_v46 = vld [vmem:[#allocation6 + $0xc8] ss:$16 sps:$4 sm:$0xff]   ;;  %v3337_v59 = vld [vmem:[#allocation6 + $0x544] ss:$16 sps:$4 sm:$0xff]  }
  0x75   :  { %1705 = vmatpush1.bf16.msra.mxu1 %v3243_v47  ;;  %v3319_v47 = vld [vmem:[#allocation6 + $0x4e4] ss:$16 sps:$4 sm:$0xff]  }
  0x76   :  { %1746 = vmatpush1.bf16.msra.mxu0 %v3244_v48  ;;  %1706 = vmatprep.subr.bf16.mxu1 %v3245_v50  ;;  %v3322_v48 = vld [vmem:[#allocation6 + $0xec] ss:$16 sps:$4 sm:$0xff]   ;;  %v3320_v50 = vld [vmem:[#allocation6 + $0xe8] ss:$16 sps:$4 sm:$0xff]  }
  0x77   :  { %1747 = vmatprep.subr.bf16.mxu0 %v3247_v51  ;;  %v3325_v51 = vld [vmem:[#allocation6 + $0x504] ss:$16 sps:$4 sm:$0xff]  }
  0x79   :  { %1707 = vmatpush1.bf16.msra.mxu1 %v3249_v53  ;;  %v3323_v53 = vld [vmem:[#allocation6 + $0x500] ss:$16 sps:$4 sm:$0xff]  }
  0x7a   :  { %1748 = vmatpush1.bf16.msra.mxu0 %v3250_v56  ;;  %1708 = vmatprep.subr.bf16.mxu1 %v3251_v57  ;;  %v3334_v56 = vld [vmem:[#allocation6 + $0x12c] ss:$16 sps:$4 sm:$0xff]   ;;  %v3329_v57 = vld [vmem:[#allocation6 + $0x520] ss:$16 sps:$4 sm:$0xff]  }
  0x7b   :  { %1749 = vmatprep.subr.bf16.mxu0 %v3253_v58  ;;  %v3332_v58 = vld [vmem:[#allocation6 + $0x128] ss:$16 sps:$4 sm:$0xff]  }
  0x7d   :  { %1709 = vmatpush1.bf16.msra.mxu1 %v3255_v61  ;;  %v3335_v61 = vld [vmem:[#allocation6 + $0x540] ss:$16 sps:$4 sm:$0xff]  }
  0x7e   :  { %1750 = vmatpush1.bf16.msra.mxu0 %v3256_v0  ;;  %1710 = vmatprep.subr.bf16.mxu1 %v3257_v1  ;;  %v3343_v0 = vld [vmem:[#allocation6 + $0x564] ss:$16 sps:$4 sm:$0xff]   ;;  %v3346_v1 = vld [vmem:[#allocation6 + $0x16c] ss:$16 sps:$4 sm:$0xff]  }
  0x7f   :  { %1751 = vmatprep.subr.bf16.mxu0 %v3259_v2  ;;  %v3341_v2 = vld [vmem:[#allocation6 + $0x560] ss:$16 sps:$4 sm:$0xff]  }
  0x81   :  { %1711 = vmatpush1.bf16.msra.mxu1 %v3261_v4  ;;  %v3344_v4 = vld [vmem:[#allocation6 + $0x168] ss:$16 sps:$4 sm:$0xff]  }
  0x82   :  { %1752 = vmatpush1.bf16.msra.mxu0 %v3262_v5  ;;  %1712 = vmatprep.subr.bf16.mxu1 %v3263_v6  ;;  %v3349_v5 = vld [vmem:[#allocation6 + $0x584] ss:$16 sps:$4 sm:$0xff]   ;;  %v3352_v6 = vld [vmem:[#allocation6 + $0x18c] ss:$16 sps:$4 sm:$0xff]  }
  0x83   :  { %1753 = vmatprep.subr.bf16.mxu0 %v3265_v7  ;;  %v3347_v7 = vld [vmem:[#allocation6 + $0x580] ss:$16 sps:$4 sm:$0xff]  }
  0x85   :  { %1713 = vmatpush1.bf16.msra.mxu1 %v3267_v8  ;;  %v3350_v8 = vld [vmem:[#allocation6 + $0x188] ss:$16 sps:$4 sm:$0xff]  }
  0x86   :  { %1754 = vmatpush1.bf16.msra.mxu0 %v3268_v9  ;;  %1714 = vmatprep.subr.bf16.mxu1 %v3269_v10  ;;  %v3355_v9 = vld [vmem:[#allocation6 + $0x5a4] ss:$16 sps:$4 sm:$0xff]   ;;  %v3358_v10 = vld [vmem:[#allocation6 + $0x1ac] ss:$16 sps:$4 sm:$0xff]  }
  0x87   :  { %1755 = vmatprep.subr.bf16.mxu0 %v3271_v11  ;;  %v3353_v11 = vld [vmem:[#allocation6 + $0x5a0] ss:$16 sps:$4 sm:$0xff]  }
  0x89   :  { %1715 = vmatpush1.bf16.msra.mxu1 %v3273_v12  ;;  %v3356_v12 = vld [vmem:[#allocation6 + $0x1a8] ss:$16 sps:$4 sm:$0xff]  }
  0x8a   :  { %1756 = vmatpush1.bf16.msra.mxu0 %v3274_v14  ;;  %1848 = vmatprep.subr.bf16.mxu1 %v3280_v16  ;;  %v3361_v14 = vld [vmem:[#allocation6 + $0x5c4] ss:$16 sps:$4 sm:$0xff]   ;;  %v3359_v16 = vld [vmem:[#allocation6 + $0x5c0] ss:$16 sps:$4 sm:$0xff]  }
  0x8b   :  { %1766 = vmatprep.subr.bf16.mxu0 %v3277_v15  ;;  %v3364_v15 = vld [vmem:[#allocation6 + $0x1cc] ss:$16 sps:$4 sm:$0xff]  }
  0x8c   :  { %1717 = vmatmul.mubr.bf16.vlgmr.msra.gmra.mrb[0].mxu1 %v3910_v13 }
  0x8d   :  { %1758 = vmatmul.mubr.bf16.vlgmr.msra.gmra.mrb[0].mxu0 %v3914_v19  ;;  %1849 = vmatpush1.bf16.msra.mxu1 %v3278_v20  ;;  %v3370_v20 = vld [vmem:[#allocation6 + $0x1ec] ss:$16 sps:$4 sm:$0xff]  }
  0x8e   :  { %1767 = vmatpush1.bf16.msra.mxu0 %v3275_v18  ;;  %1850 = vmatprep.subr.bf16.mxu1 %v3286_v22  ;;  %v3367_v18 = vld [vmem:[#allocation6 + $0x5e4] ss:$16 sps:$4 sm:$0xff]   ;;  %v3368_v22 = vld [vmem:[#allocation6 + $0x1e8] ss:$16 sps:$4 sm:$0xff]  }
  0x8f   :  { %1768 = vmatprep.subr.bf16.mxu0 %v3283_v21  ;;  %1798 = vmatprep.mubr.bf16.mxu0 %v3917_v23  ;;  %v3365_v21 = vld [vmem:[#allocation6 + $0x5e0] ss:$16 sps:$4 sm:$0xff]  }
  0x90   :  { %1880 = vmatprep.mubr.bf16.mxu1 %v384_v62  ;;  %v3338_v62 = vld [vmem:[#allocation6 + $0x148] ss:$16 sps:$4 sm:$0xff]  }
  0x91   :  { %1851 = vmatpush1.bf16.msra.mxu1 %v3284_v25  ;;  %v3377_v25 = vld [vmem:[#allocation6 + $0x20c] ss:$16 sps:$4 sm:$0xff]  }
  0x92   :  { %1769 = vmatpush1.bf16.msra.mxu0 %v3281_v24  ;;  %1852 = vmatprep.subr.bf16.mxu1 %v3292_v27  ;;  %v3374_v24 = vld [vmem:[#allocation6 + $0x604] ss:$16 sps:$4 sm:$0xff]   ;;  %v3375_v27 = vld [vmem:[#allocation6 + $0x208] ss:$16 sps:$4 sm:$0xff]  }
  0x93   :  { %1770 = vmatprep.subr.bf16.mxu0 %v3289_v26  ;;  %v3372_v26 = vld [vmem:[#allocation6 + $0x600] ss:$16 sps:$4 sm:$0xff]  }
  0x95   :  { %1853 = vmatpush1.bf16.msra.mxu1 %v3290_v29  ;;  %v3383_v29 = vld [vmem:[#allocation6 + $0x22c] ss:$16 sps:$4 sm:$0xff]  }
  0x96   :  { %1771 = vmatpush1.bf16.msra.mxu0 %v3287_v28  ;;  %1854 = vmatprep.subr.bf16.mxu1 %v3298_v31  ;;  %v3380_v28 = vld [vmem:[#allocation6 + $0x624] ss:$16 sps:$4 sm:$0xff]   ;;  %v3378_v31 = vld [vmem:[#allocation6 + $0x620] ss:$16 sps:$4 sm:$0xff]  }
  0x97   :  { %1772 = vmatprep.subr.bf16.mxu0 %v3295_v30  ;;  %v3924_v30 = vcombine.high %v3917_v23, %v3917_v23 }
  0x99   :  { %1855 = vmatpush1.bf16.msra.mxu1 %v3296_v33  ;;  %v3386_v33 = vld [vmem:[#allocation6 + $0x644] ss:$16 sps:$4 sm:$0xff]  }
  0x9a   :  { %1773 = vmatpush1.bf16.msra.mxu0 %v3293_v32  ;;  %1856 = vmatprep.subr.bf16.mxu1 %v3304_v35  ;;  %v3381_v32 = vld [vmem:[#allocation6 + $0x228] ss:$16 sps:$4 sm:$0xff]   ;;  %v3384_v35 = vld [vmem:[#allocation6 + $0x640] ss:$16 sps:$4 sm:$0xff]  }
  0x9b   :  { %1774 = vmatprep.subr.bf16.mxu0 %v3301_v34  ;;  %v3389_v34 = vld [vmem:[#allocation6 + $0x24c] ss:$16 sps:$4 sm:$0xff]  }
  0x9d   :  { %1857 = vmatpush1.bf16.msra.mxu1 %v3302_v37  ;;  %v3392_v37 = vld [vmem:[#allocation6 + $0x664] ss:$16 sps:$4 sm:$0xff]  }
  0x9e   :  { %1775 = vmatpush1.bf16.msra.mxu0 %v3299_v36  ;;  %1858 = vmatprep.subr.bf16.mxu1 %v3310_v39  ;;  %v3387_v36 = vld [vmem:[#allocation6 + $0x248] ss:$16 sps:$4 sm:$0xff]  }
  0x9f   :  { %1776 = vmatprep.subr.bf16.mxu0 %v3307_v38  ;;  %v3390_v38 = vld [vmem:[#allocation6 + $0x660] ss:$16 sps:$4 sm:$0xff]   ;;  %v3393_v39 = vld [vmem:[#allocation6 + $0x268] ss:$16 sps:$4 sm:$0xff]  }
  0xa1   :  { %1859 = vmatpush1.bf16.msra.mxu1 %v3308_v41  ;;  %v3401_v41 = vld [vmem:[#allocation6 + $0x28c] ss:$16 sps:$4 sm:$0xff]  }
  0xa2   :  { %1777 = vmatpush1.bf16.msra.mxu0 %v3305_v40  ;;  %1860 = vmatprep.subr.bf16.mxu1 %v3316_v44  ;;  %v3398_v40 = vld [vmem:[#allocation6 + $0x684] ss:$16 sps:$4 sm:$0xff]  }
  0xa3   :  { %1778 = vmatprep.subr.bf16.mxu0 %v3313_v42  ;;  %v3396_v42 = vld [vmem:[#allocation6 + $0x680] ss:$16 sps:$4 sm:$0xff]   ;;  %v3404_v44 = vld [vmem:[#allocation6 + $0x6a4] ss:$16 sps:$4 sm:$0xff]  }
  0xa5   :  { %1861 = vmatpush1.bf16.msra.mxu1 %v3314_v46  ;;  %v3402_v46 = vld [vmem:[#allocation6 + $0x6a0] ss:$16 sps:$4 sm:$0xff]  }
  0xa6   :  { %1779 = vmatpush1.bf16.msra.mxu0 %v3311_v45  ;;  %1862 = vmatprep.subr.bf16.mxu1 %v3322_v48  ;;  %v3407_v45 = vld [vmem:[#allocation6 + $0x2ac] ss:$16 sps:$4 sm:$0xff]   ;;  %v3410_v48 = vld [vmem:[#allocation6 + $0x6c4] ss:$16 sps:$4 sm:$0xff]  }
  0xa7   :  { %1780 = vmatprep.subr.bf16.mxu0 %v3319_v47  ;;  %v3405_v47 = vld [vmem:[#allocation6 + $0x2a8] ss:$16 sps:$4 sm:$0xff]  }
  0xa9   :  { %1863 = vmatpush1.bf16.msra.mxu1 %v3320_v50  ;;  %v3408_v50 = vld [vmem:[#allocation6 + $0x6c0] ss:$16 sps:$4 sm:$0xff]  }
  0xaa   :  { %1781 = vmatpush1.bf16.msra.mxu0 %v3317_v49  ;;  %1864 = vmatprep.subr.bf16.mxu1 %v3328_v52  ;;  %v3413_v49 = vld [vmem:[#allocation6 + $0x2cc] ss:$16 sps:$4 sm:$0xff]   ;;  %v3416_v52 = vld [vmem:[#allocation6 + $0x6e4] ss:$16 sps:$4 sm:$0xff]  }
  0xab   :  { %1782 = vmatprep.subr.bf16.mxu0 %v3325_v51  ;;  %v3411_v51 = vld [vmem:[#allocation6 + $0x2c8] ss:$16 sps:$4 sm:$0xff]  }
  0xad   :  { %1865 = vmatpush1.bf16.msra.mxu1 %v3326_v54  ;;  %v3414_v54 = vld [vmem:[#allocation6 + $0x6e0] ss:$16 sps:$4 sm:$0xff]  }
  0xae   :  { %1783 = vmatpush1.bf16.msra.mxu0 %v3323_v53  ;;  %1866 = vmatprep.subr.bf16.mxu1 %v3334_v56  ;;  %v3419_v53 = vld [vmem:[#allocation6 + $0x2ec] ss:$16 sps:$4 sm:$0xff]   ;;  %v3422_v56 = vld [vmem:[#allocation6 + $0x704] ss:$16 sps:$4 sm:$0xff]  }
  0xaf   :  { %1784 = vmatprep.subr.bf16.mxu0 %v3331_v55  ;;  %v3417_v55 = vld [vmem:[#allocation6 + $0x2e8] ss:$16 sps:$4 sm:$0xff]  }
  0xb1   :  { %1867 = vmatpush1.bf16.msra.mxu1 %v3332_v58  ;;  %v3420_v58 = vld [vmem:[#allocation6 + $0x700] ss:$16 sps:$4 sm:$0xff]  }
  0xb2   :  { %1785 = vmatpush1.bf16.msra.mxu0 %v3329_v57  ;;  %1868 = vmatprep.subr.bf16.mxu1 %v3340_v60  ;;  %v3425_v57 = vld [vmem:[#allocation6 + $0x30c] ss:$16 sps:$4 sm:$0xff]   ;;  %v3428_v60 = vld [vmem:[#allocation6 + $0x724] ss:$16 sps:$4 sm:$0xff]  }
  0xb3   :  { %1786 = vmatprep.subr.bf16.mxu0 %v3337_v59  ;;  %v3423_v59 = vld [vmem:[#allocation6 + $0x308] ss:$16 sps:$4 sm:$0xff]  }
  0xb5   :  { %1869 = vmatpush1.bf16.msra.mxu1 %v3338_v62  ;;  %v3426_v62 = vld [vmem:[#allocation6 + $0x720] ss:$16 sps:$4 sm:$0xff]  }
  0xb6   :  { %1787 = vmatpush1.bf16.msra.mxu0 %v3335_v61  ;;  %1870 = vmatprep.subr.bf16.mxu1 %v3346_v1  ;;  %v3431_v61 = vld [vmem:[#allocation6 + $0x32c] ss:$16 sps:$4 sm:$0xff]   ;;  %v3434_v1 = vld [vmem:[#allocation6 + $0x744] ss:$16 sps:$4 sm:$0xff]  }
  0xb7   :  { %1788 = vmatprep.subr.bf16.mxu0 %v3343_v0  ;;  %v3429_v0 = vld [vmem:[#allocation6 + $0x328] ss:$16 sps:$4 sm:$0xff]  }
  0xb9   :  { %1871 = vmatpush1.bf16.msra.mxu1 %v3344_v4  ;;  %v3432_v4 = vld [vmem:[#allocation6 + $0x740] ss:$16 sps:$4 sm:$0xff]  }
  0xba   :  { %1789 = vmatpush1.bf16.msra.mxu0 %v3341_v2  ;;  %1872 = vmatprep.subr.bf16.mxu1 %v3352_v6  ;;  %v3437_v2 = vld [vmem:[#allocation6 + $0x34c] ss:$16 sps:$4 sm:$0xff]   ;;  %v3440_v6 = vld [vmem:[#allocation6 + $0x764] ss:$16 sps:$4 sm:$0xff]  }
  0xbb   :  { %1790 = vmatprep.subr.bf16.mxu0 %v3349_v5  ;;  %v3435_v5 = vld [vmem:[#allocation6 + $0x348] ss:$16 sps:$4 sm:$0xff]  }
  0xbd   :  { %1873 = vmatpush1.bf16.msra.mxu1 %v3350_v8  ;;  %v3438_v8 = vld [vmem:[#allocation6 + $0x760] ss:$16 sps:$4 sm:$0xff]  }
  0xbe   :  { %1791 = vmatpush1.bf16.msra.mxu0 %v3347_v7  ;;  %1874 = vmatprep.subr.bf16.mxu1 %v3358_v10  ;;  %v3443_v7 = vld [vmem:[#allocation6 + $0x36c] ss:$16 sps:$4 sm:$0xff]   ;;  %v3446_v10 = vld [vmem:[#allocation6 + $0x784] ss:$16 sps:$4 sm:$0xff]  }
  0xbf   :  { %1792 = vmatprep.subr.bf16.mxu0 %v3355_v9  ;;  %v3441_v9 = vld [vmem:[#allocation6 + $0x368] ss:$16 sps:$4 sm:$0xff]  }
  0xc1   :  { %1875 = vmatpush1.bf16.msra.mxu1 %v3356_v12  ;;  %v3444_v12 = vld [vmem:[#allocation6 + $0x780] ss:$16 sps:$4 sm:$0xff]  }
  0xc2   :  { %1793 = vmatpush1.bf16.msra.mxu0 %v3353_v11  ;;  %1876 = vmatprep.subr.bf16.mxu1 %v3364_v15  ;;  %v3449_v11 = vld [vmem:[#allocation6 + $0x38c] ss:$16 sps:$4 sm:$0xff]   ;;  %v3452_v15 = vld [vmem:[#allocation6 + $0x7a4] ss:$16 sps:$4 sm:$0xff]  }
  0xc3   :  { %1794 = vmatprep.subr.bf16.mxu0 %v3361_v14  ;;  %v3447_v14 = vld [vmem:[#allocation6 + $0x388] ss:$16 sps:$4 sm:$0xff]  }
  0xc5   :  { %1877 = vmatpush1.bf16.msra.mxu1 %v3362_v17  ;;  %v3450_v17 = vld [vmem:[#allocation6 + $0x7a0] ss:$16 sps:$4 sm:$0xff]  }
  0xc6   :  { %1795 = vmatpush1.bf16.msra.mxu0 %v3359_v16  ;;  %1878 = vmatprep.subr.bf16.mxu1 %v3370_v20  ;;  %v3455_v16 = vld [vmem:[#allocation6 + $0x3ac] ss:$16 sps:$4 sm:$0xff]   ;;  %v3458_v20 = vld [vmem:[#allocation6 + $0x7c4] ss:$16 sps:$4 sm:$0xff]  }
  0xc7   :  { %1796 = vmatprep.subr.bf16.mxu0 %v3367_v18  ;;  %v3453_v18 = vld [vmem:[#allocation6 + $0x3a8] ss:$16 sps:$4 sm:$0xff]  }
  0xc9   :  { %1879 = vmatpush1.bf16.msra.mxu1 %v3368_v22  ;;  %v3456_v22 = vld [vmem:[#allocation6 + $0x7c0] ss:$16 sps:$4 sm:$0xff]  }
  0xca   :  { %1797 = vmatpush1.bf16.msra.mxu0 %v3365_v21  ;;  %1889 = vmatprep.subr.bf16.mxu1 %v3377_v25  ;;  %v3461_v21 = vld [vmem:[#allocation6 + $0x3cc] ss:$16 sps:$4 sm:$0xff]   ;;  %v3464_v25 = vld [vmem:[#allocation6 + $0x7e4] ss:$16 sps:$4 sm:$0xff]  }
  0xcb   :  { %1807 = vmatprep.subr.bf16.mxu0 %v3374_v24  ;;  %v3459_v24 = vld [vmem:[#allocation6 + $0x3c8] ss:$16 sps:$4 sm:$0xff]  }
  0xcc   :  { %1881 = vmatmul.mubr.bf16.vlgmr.msra.gmra.mrb[4].mxu1 %v3910_v13  ;;  %v3395_v13 = vld [vmem:[#allocation6 + $0x26c] ss:$16 sps:$4 sm:$0xff]  }
  0xcd   :  { %1799 = vmatmul.mubr.bf16.vlgmr.msra.gmra.mrb[0].mxu0 %v3904_v63  ;;  %1890 = vmatpush1.bf16.msra.mxu1 %v3375_v27  ;;  %v3462_v27 = vld [vmem:[#allocation6 + $0x7e0] ss:$16 sps:$4 sm:$0xff]  }
  0xce   :  { %1808 = vmatpush1.bf16.msra.mxu0 %v3372_v26  ;;  %1891 = vmatprep.subr.bf16.mxu1 %v3383_v29  ;;  %v3467_v26 = vld [vmem:[#allocation6 + $0x3ec] ss:$16 sps:$4 sm:$0xff]  }
  0xcf   :  { %1809 = vmatprep.subr.bf16.mxu0 %v3380_v28  ;;  %1839 = vmatprep.mubr.bf16.mxu0 %v3924_v30  ;;  %v3465_v28 = vld [vmem:[#allocation6 + $0x3e8] ss:$16 sps:$4 sm:$0xff]   ;;  %v3470_v29 = vld [vmem:[#allocation6 + $0x40c] ss:$16 sps:$4 sm:$0xff]  }
  0xd0   :  { %1921 = vmatprep.mubr.bf16.mxu1 %v3906_v3  ;;  %v3399_v3 = vld [vmem:[#allocation6 + $0x288] ss:$16 sps:$4 sm:$0xff]  }
  0xd1   :  { %1892 = vmatpush1.bf16.msra.mxu1 %v3381_v32  ;;  %v3932_v32 = vcombine.high %v3904_v63, %v3904_v63 }
  0xd2   :  { %1810 = vmatpush1.bf16.msra.mxu0 %v3378_v31  ;;  %1893 = vmatprep.subr.bf16.mxu1 %v3389_v34  ;;  %v3468_v31 = vld [vmem:[#allocation6 + $0x408] ss:$16 sps:$4 sm:$0xff]  }
  0xd3   :  { %1811 = vmatprep.subr.bf16.mxu0 %v3386_v33  ;;  %v3473_v33 = vld [vmem:[#allocation6 + $0x42c] ss:$16 sps:$4 sm:$0xff]   ;;  %v3471_v34 = vld [vmem:[#allocation6 + $0x428] ss:$16 sps:$4 sm:$0xff]  }
  0xd5   :  { %1894 = vmatpush1.bf16.msra.mxu1 %v3387_v36  ;;  %v3474_v36 = vld [vmem:[#allocation6 + $0x448] ss:$16 sps:$4 sm:$0xff]  }
  0xd6   :  { %1812 = vmatpush1.bf16.msra.mxu0 %v3384_v35  ;;  %1895 = vmatprep.subr.bf16.mxu1 %v3395_v13  ;;  %v3476_v35 = vld [vmem:[#allocation6 + $0x44c] ss:$16 sps:$4 sm:$0xff]   ;;  %v3477_v13 = vld [vmem:[#allocation6 + $0x468] ss:$16 sps:$4 sm:$0xff]  }
  0xd7   :  { %1813 = vmatprep.subr.bf16.mxu0 %v3392_v37  ;;  %v3479_v37 = vld [vmem:[#allocation6 + $0x46c] ss:$16 sps:$4 sm:$0xff]  }
  0xd9   :  { %1896 = vmatpush1.bf16.msra.mxu1 %v3393_v39  ;;  %v3480_v39 = vld [vmem:[#allocation6 + $0x488] ss:$16 sps:$4 sm:$0xff]  }
  0xda   :  { %1814 = vmatpush1.bf16.msra.mxu0 %v3390_v38  ;;  %1897 = vmatprep.subr.bf16.mxu1 %v3401_v41  ;;  %v3482_v38 = vld [vmem:[#allocation6 + $0x48c] ss:$16 sps:$4 sm:$0xff]   ;;  %v3483_v41 = vld [vmem:[#allocation6 + $0x4a8] ss:$16 sps:$4 sm:$0xff]  }
  0xdb   :  { %1815 = vmatprep.subr.bf16.mxu0 %v3398_v40  ;;  %v3485_v40 = vld [vmem:[#allocation6 + $0x4ac] ss:$16 sps:$4 sm:$0xff]  }
  0xdd   :  { %1898 = vmatpush1.bf16.msra.mxu1 %v3399_v3  ;;  %v3489_v3 = vld [vmem:[#allocation6 + $0x4e8] ss:$16 sps:$4 sm:$0xff]  }
  0xde   :  { %1816 = vmatpush1.bf16.msra.mxu0 %v3396_v42  ;;  %1899 = vmatprep.subr.bf16.mxu1 %v3407_v45  ;;  %v3486_v42 = vld [vmem:[#allocation6 + $0x4c8] ss:$16 sps:$4 sm:$0xff]  }
  0xdf   :  { %1817 = vmatprep.subr.bf16.mxu0 %v3404_v44  ;;  %v3494_v44 = vld [vmem:[#allocation6 + $0x50c] ss:$16 sps:$4 sm:$0xff]   ;;  %v3492_v45 = vld [vmem:[#allocation6 + $0x508] ss:$16 sps:$4 sm:$0xff]  }
  0xe1   :  { %1900 = vmatpush1.bf16.msra.mxu1 %v3405_v47  ;;  %v3495_v47 = vld [vmem:[#allocation6 + $0x528] ss:$16 sps:$4 sm:$0xff]  }
  0xe2   :  { %1818 = vmatpush1.bf16.msra.mxu0 %v3402_v46  ;;  %1901 = vmatprep.subr.bf16.mxu1 %v3413_v49  ;;  %v3497_v46 = vld [vmem:[#allocation6 + $0x52c] ss:$16 sps:$4 sm:$0xff]   ;;  %v3498_v49 = vld [vmem:[#allocation6 + $0x548] ss:$16 sps:$4 sm:$0xff]  }
  0xe3   :  { %1819 = vmatprep.subr.bf16.mxu0 %v3410_v48  ;;  %v3500_v48 = vld [vmem:[#allocation6 + $0x54c] ss:$16 sps:$4 sm:$0xff]  }
  0xe5   :  { %1902 = vmatpush1.bf16.msra.mxu1 %v3411_v51  ;;  %v3501_v51 = vld [vmem:[#allocation6 + $0x568] ss:$16 sps:$4 sm:$0xff]  }
  0xe6   :  { %1820 = vmatpush1.bf16.msra.mxu0 %v3408_v50  ;;  %1903 = vmatprep.subr.bf16.mxu1 %v3419_v53  ;;  %v3503_v50 = vld [vmem:[#allocation6 + $0x56c] ss:$16 sps:$4 sm:$0xff]   ;;  %v3504_v53 = vld [vmem:[#allocation6 + $0x588] ss:$16 sps:$4 sm:$0xff]  }
  0xe7   :  { %1821 = vmatprep.subr.bf16.mxu0 %v3416_v52  ;;  %v3506_v52 = vld [vmem:[#allocation6 + $0x58c] ss:$16 sps:$4 sm:$0xff]  }
  0xe9   :  { %1904 = vmatpush1.bf16.msra.mxu1 %v3417_v55  ;;  %v3507_v55 = vld [vmem:[#allocation6 + $0x5a8] ss:$16 sps:$4 sm:$0xff]  }
  0xea   :  { %1822 = vmatpush1.bf16.msra.mxu0 %v3414_v54  ;;  %1905 = vmatprep.subr.bf16.mxu1 %v3425_v57  ;;  %v3509_v54 = vld [vmem:[#allocation6 + $0x5ac] ss:$16 sps:$4 sm:$0xff]   ;;  %v3510_v57 = vld [vmem:[#allocation6 + $0x5c8] ss:$16 sps:$4 sm:$0xff]  }
  0xeb   :  { %1823 = vmatprep.subr.bf16.mxu0 %v3422_v56  ;;  %v3512_v56 = vld [vmem:[#allocation6 + $0x5cc] ss:$16 sps:$4 sm:$0xff]  }
  0xed   :  { %1906 = vmatpush1.bf16.msra.mxu1 %v3423_v59  ;;  %v3513_v59 = vld [vmem:[#allocation6 + $0x5e8] ss:$16 sps:$4 sm:$0xff]  }
  0xee   :  { %1824 = vmatpush1.bf16.msra.mxu0 %v3420_v58  ;;  %1907 = vmatprep.subr.bf16.mxu1 %v3431_v61  ;;  %v3515_v58 = vld [vmem:[#allocation6 + $0x5ec] ss:$16 sps:$4 sm:$0xff]   ;;  %v3516_v61 = vld [vmem:[#allocation6 + $0x608] ss:$16 sps:$4 sm:$0xff]  }
  0xef   :  { %1825 = vmatprep.subr.bf16.mxu0 %v3428_v60  ;;  %v3518_v60 = vld [vmem:[#allocation6 + $0x60c] ss:$16 sps:$4 sm:$0xff]  }
  0xf1   :  { %1908 = vmatpush1.bf16.msra.mxu1 %v3429_v0  ;;  %v3519_v0 = vld [vmem:[#allocation6 + $0x628] ss:$16 sps:$4 sm:$0xff]  }
  0xf2   :  { %1826 = vmatpush1.bf16.msra.mxu0 %v3426_v62  ;;  %1909 = vmatprep.subr.bf16.mxu1 %v3437_v2  ;;  %v3521_v62 = vld [vmem:[#allocation6 + $0x62c] ss:$16 sps:$4 sm:$0xff]   ;;  %v3522_v2 = vld [vmem:[#allocation6 + $0x648] ss:$16 sps:$4 sm:$0xff]  }
  0xf3   :  { %1827 = vmatprep.subr.bf16.mxu0 %v3434_v1  ;;  %v3524_v1 = vld [vmem:[#allocation6 + $0x64c] ss:$16 sps:$4 sm:$0xff]  }
  0xf5   :  { %1910 = vmatpush1.bf16.msra.mxu1 %v3435_v5  ;;  %v3525_v5 = vld [vmem:[#allocation6 + $0x668] ss:$16 sps:$4 sm:$0xff]  }
  0xf6   :  { %1828 = vmatpush1.bf16.msra.mxu0 %v3432_v4  ;;  %1911 = vmatprep.subr.bf16.mxu1 %v3443_v7  ;;  %v3527_v4 = vld [vmem:[#allocation6 + $0x66c] ss:$16 sps:$4 sm:$0xff]   ;;  %v3528_v7 = vld [vmem:[#allocation6 + $0x688] ss:$16 sps:$4 sm:$0xff]  }
  0xf7   :  { %1829 = vmatprep.subr.bf16.mxu0 %v3440_v6  ;;  %v3530_v6 = vld [vmem:[#allocation6 + $0x68c] ss:$16 sps:$4 sm:$0xff]  }
  0xf9   :  { %1912 = vmatpush1.bf16.msra.mxu1 %v3441_v9  ;;  %v3536_v9 = vld [vmem:[#allocation6 + $0x6cc] ss:$16 sps:$4 sm:$0xff]  }
  0xfa   :  { %1830 = vmatpush1.bf16.msra.mxu0 %v3438_v8  ;;  %1913 = vmatprep.subr.bf16.mxu1 %v3449_v11  ;;  %v3533_v8 = vld [vmem:[#allocation6 + $0x6ac] ss:$16 sps:$4 sm:$0xff]  }
  0xfb   :  { %1831 = vmatprep.subr.bf16.mxu0 %v3446_v10 }
  0xfd   :  { %1914 = vmatpush1.bf16.msra.mxu1 %v3447_v14 }
  0xfe   :  { %1832 = vmatpush1.bf16.msra.mxu0 %v3444_v12  ;;  %1915 = vmatprep.subr.bf16.mxu1 %v3455_v16  ;;  %v3534_v12 = vld [vmem:[#allocation6 + $0x6c8] ss:$16 sps:$4 sm:$0xff]  }
  0xff   :  { %1833 = vmatprep.subr.bf16.mxu0 %v3452_v15  ;;  %v3539_v15 = vld [vmem:[#allocation6 + $0x6ec] ss:$16 sps:$4 sm:$0xff]   ;;  %v3537_v16 = vld [vmem:[#allocation6 + $0x6e8] ss:$16 sps:$4 sm:$0xff]  }
 0x101   :  { %1916 = vmatpush1.bf16.msra.mxu1 %v3453_v18  ;;  %v3566_v18 = vld [vmem:[#allocation8 + $0x4] ss:$8 sps:$4 sm:$0xff]  }
 0x102   :  { %1834 = vmatpush1.bf16.msra.mxu0 %v3450_v17  ;;  %1917 = vmatprep.subr.bf16.mxu1 %v3461_v21  ;;  %v3564_v17 = vld [vmem:[#allocation8] ss:$8 sps:$4 sm:$0xff]   ;;  %v3569_v21 = vld [vmem:[#allocation8 + $0x14] ss:$8 sps:$4 sm:$0xff]  }
 0x103   :  { %1835 = vmatprep.subr.bf16.mxu0 %v3458_v20  ;;  %v3542_v20 = vld [vmem:[#allocation6 + $0x70c] ss:$16 sps:$4 sm:$0xff]  }
 0x105   :  { %1918 = vmatpush1.bf16.msra.mxu1 %v3459_v24  ;;  %v3540_v24 = vld [vmem:[#allocation6 + $0x708] ss:$16 sps:$4 sm:$0xff]  }
 0x106   :  { %1836 = vmatpush1.bf16.msra.mxu0 %v3456_v22  ;;  %1919 = vmatprep.subr.bf16.mxu1 %v3467_v26  ;;  %v3567_v22 = vld [vmem:[#allocation8 + $0x10] ss:$8 sps:$4 sm:$0xff]   ;;  %v3545_v26 = vld [vmem:[#allocation6 + $0x72c] ss:$16 sps:$4 sm:$0xff]  }
 0x107   :  { %1837 = vmatprep.subr.bf16.mxu0 %v3464_v25  ;;  %v3572_v25 = vld [vmem:[#allocation8 + $0x24] ss:$8 sps:$4 sm:$0xff]  }
 0x109   :  { %1920 = vmatpush1.bf16.msra.mxu1 %v3465_v28  ;;  %v3543_v28 = vld [vmem:[#allocation6 + $0x728] ss:$16 sps:$4 sm:$0xff]  }
 0x10a   :  { %1838 = vmatpush1.bf16.msra.mxu0 %v3462_v27  ;;  %1930 = vmatprep.subr.bf16.mxu1 %v3470_v29  ;;  %v3570_v27 = vld [vmem:[#allocation8 + $0x20] ss:$8 sps:$4 sm:$0xff]   ;;  %v3575_v29 = vld [vmem:[#allocation8 + $0x34] ss:$8 sps:$4 sm:$0xff]  }
 0x10b   :  { %2500 = vmatprep.subr.bf16.mxu0 %v3566_v18  ;;  %v3668_v18 = vld [vmem:[#allocation9 + $0x60] sm:$0xff]  }
 0x10c   :  { %1922 = vmatmul.mubr.bf16.vlgmr.msra.gmra.mrb[4].mxu1 %v3914_v19  ;;  %v3488_v19 = vld [vmem:[#allocation6 + $0x4cc] ss:$16 sps:$4 sm:$0xff]  }
 0x10d   :  { %1840 = vmatmul.mubr.bf16.vlgmr.msra.gmra.mrb[0].mxu0 %v3932_v32  ;;  %1931 = vmatpush1.bf16.msra.mxu1 %v3468_v31  ;;  %v3548_v31 = vld [vmem:[#allocation6 + $0x74c] ss:$16 sps:$4 sm:$0xff]  }
 0x10e   :  { %1962 = vmatprep.mubr.bf16.mxu1 %v3917_v23  ;;  %1932 = vmatprep.subr.bf16.mxu1 %v3473_v33  ;;  %v3491_v23 = vld [vmem:[#allocation6 + $0x4ec] ss:$16 sps:$4 sm:$0xff]   ;;  %v3573_v33 = vld [vmem:[#allocation8 + $0x30] ss:$8 sps:$4 sm:$0xff]  }
 0x10f   :  { %2501 = vmatpush1.bf16.msra.mxu0 %v3564_v17  ;;  %v3667_v17 = vld [vmem:[#allocation9 + $0x18] sm:$0xff]  }
 0x110   :  { %2502 = vmatprep.subr.bf16.mxu0 %v3569_v21  ;;  %v3670_v21 = vld [vmem:[#allocation9 + $0x68] sm:$0xff]  }
 0x111   :  { %1933 = vmatpush1.bf16.msra.mxu1 %v3471_v34  ;;  %v3546_v34 = vld [vmem:[#allocation6 + $0x748] ss:$16 sps:$4 sm:$0xff]  }
 0x112   :  { %1934 = vmatprep.subr.bf16.mxu1 %v3476_v35  ;;  %v3578_v35 = vld [vmem:[#allocation8 + $0x44] ss:$8 sps:$4 sm:$0xff]  }
 0x113   :  { %2503 = vmatpush1.bf16.msra.mxu0 %v3567_v22  ;;  %v3671_v22 = vld [vmem:[#allocation9 + $0x28] sm:$0xff]  }
 0x114   :  { %2504 = vmatprep.subr.bf16.mxu0 %v3572_v25  ;;  %v2048_v25 = vsub.s32 1, %v3895_v43 }
 0x115   :  { %1935 = vmatpush1.bf16.msra.mxu1 %v3474_v36  ;;  %v3551_v36 = vld [vmem:[#allocation6 + $0x76c] ss:$16 sps:$4 sm:$0xff]  }
 0x116   :  { %1936 = vmatprep.subr.bf16.mxu1 %v3479_v37  ;;  %v3576_v37 = vld [vmem:[#allocation8 + $0x40] ss:$8 sps:$4 sm:$0xff]  }
 0x117   :  { %2505 = vmatpush1.bf16.msra.mxu0 %v3570_v27  ;;  %v2056_v27 = vsub.s32 3, %v3895_v43 }
 0x118   :  { %2506 = vmatprep.subr.bf16.mxu0 %v3575_v29  ;;  %v3805_v29 = vmov 1983009808  }
 0x119   :  { %1937 = vmatpush1.bf16.msra.mxu1 %v3477_v13  ;;  %v3549_v13 = vld [vmem:[#allocation6 + $0x768] ss:$16 sps:$4 sm:$0xff]  }
 0x11a   :  { %1938 = vmatprep.subr.bf16.mxu1 %v3482_v38  ;;  %v3581_v38 = vld [vmem:[#allocation8 + $0x54] ss:$8 sps:$4 sm:$0xff]  }
 0x11b   :  { %2507 = vmatpush1.bf16.msra.mxu0 %v3573_v33 }
 0x11c   :  { %2508 = vmatprep.subr.bf16.mxu0 %v3578_v35 }
 0x11d   :  { %1939 = vmatpush1.bf16.msra.mxu1 %v3480_v39  ;;  %v3554_v39 = vld [vmem:[#allocation6 + $0x78c] ss:$16 sps:$4 sm:$0xff]  }
 0x11e   :  { %1940 = vmatprep.subr.bf16.mxu1 %v3485_v40  ;;  %v3579_v40 = vld [vmem:[#allocation8 + $0x50] ss:$8 sps:$4 sm:$0xff]  }
 0x11f   :  { %2509 = vmatpush1.bf16.msra.mxu0 %v3576_v37 }
 0x120   :  { %2510 = vmatprep.subr.bf16.mxu0 %v3581_v38 }
 0x121   :  { %1941 = vmatpush1.bf16.msra.mxu1 %v3483_v41  ;;  %v3552_v41 = vld [vmem:[#allocation6 + $0x788] ss:$16 sps:$4 sm:$0xff]  }
 0x122   :  { %1942 = vmatprep.subr.bf16.mxu1 %v3488_v19  ;;  %v3584_v19 = vld [vmem:[#allocation8 + $0x64] ss:$8 sps:$4 sm:$0xff]  }
 0x123   :  { %2511 = vmatpush1.bf16.msra.mxu0 %v3579_v40 }
 0x124   :  { %2512 = vmatprep.subr.bf16.mxu0 %v3584_v19 }
 0x125   :  { %1943 = vmatpush1.bf16.msra.mxu1 %v3486_v42  ;;  %v3557_v42 = vld [vmem:[#allocation6 + $0x7ac] ss:$16 sps:$4 sm:$0xff]  }
 0x126   :  { %1944 = vmatprep.subr.bf16.mxu1 %v3491_v23  ;;  %v3582_v23 = vld [vmem:[#allocation8 + $0x60] ss:$8 sps:$4 sm:$0xff]  }
 0x127   :  { %2513 = vmatpush1.bf16.msra.mxu0 %v3582_v23 }
 0x129   :  { %1945 = vmatpush1.bf16.msra.mxu1 %v3489_v3  ;;  %v3555_v3 = vld [vmem:[#allocation6 + $0x7a8] ss:$16 sps:$4 sm:$0xff]  }
 0x12a   :  { %1946 = vmatprep.subr.bf16.mxu1 %v3494_v44  ;;  %v3587_v44 = vld [vmem:[#allocation8 + $0x74] ss:$8 sps:$4 sm:$0xff]  }
 0x12b   :  { %2514 = vmatprep.subr.bf16.mxu0 %v3587_v44 }
 0x12d   :  { %1947 = vmatpush1.bf16.msra.mxu1 %v3492_v45  ;;  %v3560_v45 = vld [vmem:[#allocation6 + $0x7cc] ss:$16 sps:$4 sm:$0xff]  }
 0x12e   :  { %1948 = vmatprep.subr.bf16.mxu1 %v3497_v46  ;;  %v3585_v46 = vld [vmem:[#allocation8 + $0x70] ss:$8 sps:$4 sm:$0xff]  }
 0x12f   :  { %2515 = vmatpush1.bf16.msra.mxu0 %v3585_v46 }
 0x131   :  { %1949 = vmatpush1.bf16.msra.mxu1 %v3495_v47  ;;  %v3558_v47 = vld [vmem:[#allocation6 + $0x7c8] ss:$16 sps:$4 sm:$0xff]  }
 0x132   :  { %1950 = vmatprep.subr.bf16.mxu1 %v3500_v48  ;;  %v3590_v48 = vld [vmem:[#allocation8 + $0x84] ss:$8 sps:$4 sm:$0xff]  }
 0x133   :  { %2516 = vmatprep.subr.bf16.mxu0 %v3590_v48 }
 0x135   :  { %1951 = vmatpush1.bf16.msra.mxu1 %v3498_v49  ;;  %v3563_v49 = vld [vmem:[#allocation6 + $0x7ec] ss:$16 sps:$4 sm:$0xff]  }
 0x136   :  { %1952 = vmatprep.subr.bf16.mxu1 %v3503_v50  ;;  %v3588_v50 = vld [vmem:[#allocation8 + $0x80] ss:$8 sps:$4 sm:$0xff]  }
 0x137   :  { %2517 = vmatpush1.bf16.msra.mxu0 %v3588_v50 }
 0x139   :  { %1953 = vmatpush1.bf16.msra.mxu1 %v3501_v51  ;;  %v3561_v51 = vld [vmem:[#allocation6 + $0x7e8] ss:$16 sps:$4 sm:$0xff]  }
 0x13a   :  { %1954 = vmatprep.subr.bf16.mxu1 %v3506_v52  ;;  %v3593_v52 = vld [vmem:[#allocation8 + $0x94] ss:$8 sps:$4 sm:$0xff]  }
 0x13b   :  { %2518 = vmatprep.subr.bf16.mxu0 %v3593_v52 }
 0x13d   :  { %1955 = vmatpush1.bf16.msra.mxu1 %v3504_v53  ;;  %v3591_v53 = vld [vmem:[#allocation8 + $0x90] ss:$8 sps:$4 sm:$0xff]  }
 0x13e   :  { %1956 = vmatprep.subr.bf16.mxu1 %v3509_v54  ;;  %v3596_v54 = vld [vmem:[#allocation8 + $0xa4] ss:$8 sps:$4 sm:$0xff]   ;;  %2519 = vmatpush1.bf16.msra.mxu0 %v3591_v53 }
 0x13f   :  { %2520 = vmatprep.subr.bf16.mxu0 %v3596_v54 }
 0x141   :  { %1957 = vmatpush1.bf16.msra.mxu1 %v3507_v55  ;;  %v3594_v55 = vld [vmem:[#allocation8 + $0xa0] ss:$8 sps:$4 sm:$0xff]  }
 0x142   :  { %1958 = vmatprep.subr.bf16.mxu1 %v3512_v56  ;;  %v3599_v56 = vld [vmem:[#allocation8 + $0xb4] ss:$8 sps:$4 sm:$0xff]   ;;  %2521 = vmatpush1.bf16.msra.mxu0 %v3594_v55 }
 0x143   :  { %2522 = vmatprep.subr.bf16.mxu0 %v3599_v56  ;;  %v3612_v56 = vld [vmem:[#allocation8 + $0x100] ss:$8 sps:$4 sm:$0xff]  }
 0x145   :  { %1959 = vmatpush1.bf16.msra.mxu1 %v3510_v57  ;;  %v3597_v57 = vld [vmem:[#allocation8 + $0xb0] ss:$8 sps:$4 sm:$0xff]  }
 0x146   :  { %1960 = vmatprep.subr.bf16.mxu1 %v3515_v58  ;;  %2523 = vmatpush1.bf16.msra.mxu0 %v3597_v57 }
 0x149   :  { %1961 = vmatpush1.bf16.msra.mxu1 %v3513_v59  ;;  %v3602_v59 = vld [vmem:[#allocation8 + $0xc4] ss:$8 sps:$4 sm:$0xff]  }
 0x14a   :  { %1971 = vmatprep.subr.bf16.mxu1 %v3518_v60  ;;  %2524 = vmatprep.subr.bf16.mxu0 %v3602_v59  ;;  %v3617_v59 = vld [vmem:[#allocation8 + $0x114] ss:$8 sps:$4 sm:$0xff]  }
 0x14c   :  { %1963 = vmatmul.mubr.bf16.vlgmr.msra.gmra.mrb[4].mxu1 %v3904_v63  ;;  %v3531_v63 = vld [vmem:[#allocation6 + $0x6a8] ss:$16 sps:$4 sm:$0xff]  }
 0x14d   :  { %1972 = vmatpush1.bf16.msra.mxu1 %v3516_v61  ;;  %2003 = vmatprep.mubr.bf16.mxu1 %v3924_v30 }
 0x14e   :  { %1973 = vmatprep.subr.bf16.mxu1 %v3521_v62  ;;  %v3600_v62 = vld [vmem:[#allocation8 + $0xc0] ss:$8 sps:$4 sm:$0xff]  }
 0x14f   :  { %2525 = vmatpush1.bf16.msra.mxu0 %v3600_v62  ;;  %v3620_v62 = vld [vmem:[#allocation8 + $0x124] ss:$8 sps:$4 sm:$0xff]  }
 0x151   :  { %1974 = vmatpush1.bf16.msra.mxu1 %v3519_v0 }
 0x152   :  { %1975 = vmatprep.subr.bf16.mxu1 %v3524_v1 }
 0x155   :  { %1976 = vmatpush1.bf16.msra.mxu1 %v3522_v2 }
 0x156   :  { %1977 = vmatprep.subr.bf16.mxu1 %v3527_v4  ;;  %v3605_v4 = vld [vmem:[#allocation8 + $0xd4] ss:$8 sps:$4 sm:$0xff]  }
 0x157   :  { %2526 = vmatprep.subr.bf16.mxu0 %v3605_v4  ;;  %v3624_v4 = vld [vmem:[#allocation8 + $0x140] ss:$8 sps:$4 sm:$0xff]  }
 0x159   :  { %1978 = vmatpush1.bf16.msra.mxu1 %v3525_v5  ;;  %v3603_v5 = vld [vmem:[#allocation8 + $0xd0] ss:$8 sps:$4 sm:$0xff]  }
 0x15a   :  { %1979 = vmatprep.subr.bf16.mxu1 %v3530_v6  ;;  %2527 = vmatpush1.bf16.msra.mxu0 %v3603_v5  ;;  %v3608_v6 = vld [vmem:[#allocation8 + $0xe4] ss:$8 sps:$4 sm:$0xff]   ;;  %v3629_v5 = vld [vmem:[#allocation8 + $0x154] ss:$8 sps:$4 sm:$0xff]  }
 0x15b   :  { %2528 = vmatprep.subr.bf16.mxu0 %v3608_v6  ;;  %v3627_v6 = vld [vmem:[#allocation8 + $0x150] ss:$8 sps:$4 sm:$0xff]  }
 0x15d   :  { %1980 = vmatpush1.bf16.msra.mxu1 %v3528_v7  ;;  %v3606_v7 = vld [vmem:[#allocation8 + $0xe0] ss:$8 sps:$4 sm:$0xff]  }
 0x15e   :  { %1981 = vmatprep.subr.bf16.mxu1 %v3533_v8  ;;  %v3611_v8 = vld [vmem:[#allocation8 + $0xf4] ss:$8 sps:$4 sm:$0xff]   ;;  %2529 = vmatpush1.bf16.msra.mxu0 %v3606_v7  ;;  %v3632_v7 = vld [vmem:[#allocation8 + $0x164] ss:$8 sps:$4 sm:$0xff]  }
 0x15f   :  { %v3939_v10 = vpop.f32.mrb[0].mxu1  ;;  %2530 = vmatprep.subr.bf16.mxu0 %v3611_v8  ;;  %v3630_v8 = vld [vmem:[#allocation8 + $0x160] ss:$8 sps:$4 sm:$0xff]  }
 0x160   :  { %v3941_v30 = vpop.f32.mrb[1].mxu1 }
 0x161   :  { %v1722_v11 = vpop.f32.mrb[2].mxu1  ;;  %1982 = vmatpush1.bf16.msra.mxu1 %v3531_v63  ;;  %v3609_v63 = vld [vmem:[#allocation8 + $0xf0] ss:$8 sps:$4 sm:$0xff]  }
 0x162   :  { %v1723_v14 = vpop.f32.mrb[3].mxu1  ;;  %1983 = vmatprep.subr.bf16.mxu1 %v3536_v9  ;;  %2531 = vmatpush1.bf16.msra.mxu0 %v3609_v63  ;;  %v3614_v9 = vld [vmem:[#allocation8 + $0x104] ss:$8 sps:$4 sm:$0xff]   ;;  %v3635_v63 = vld [vmem:[#allocation8 + $0x174] ss:$8 sps:$4 sm:$0xff]  }
 0x163   :  { %2541 = vmatprep.subr.bf16.mxu0 %v3614_v9  ;;  %v3662_v11 = vld [vmem:[#allocation9 + $0x48] sm:$0xff]   ;;  %v3664_v14 = vld [vmem:[#allocation9 + $0x50] sm:$0xff]  }
 0x164   :  { %v3633_v9 = vld [vmem:[#allocation8 + $0x170] ss:$8 sps:$4 sm:$0xff]  }
 0x165   :  { %1984 = vmatpush1.bf16.msra.mxu1 %v3534_v12  ;;  %v3663_v12 = vld [vmem:[#allocation9 + $0x8] sm:$0xff]  }
 0x166   :  { %1985 = vmatprep.subr.bf16.mxu1 %v3539_v15  ;;  %v3665_v15 = vld [vmem:[#allocation9 + $0x10] sm:$0xff]  }
 0x169   :  { %1986 = vmatpush1.bf16.msra.mxu1 %v3537_v16  ;;  %v3666_v16 = vld [vmem:[#allocation9 + $0x58] sm:$0xff]  }
 0x16a   :  { %1987 = vmatprep.subr.bf16.mxu1 %v3542_v20  ;;  %v3669_v20 = vld [vmem:[#allocation9 + $0x20] sm:$0xff]  }
 0x16d   :  { %1988 = vmatpush1.bf16.msra.mxu1 %v3540_v24  ;;  %v2044_v24 = vsub.s32 0, %v3895_v43 }
 0x16e   :  { %1989 = vmatprep.subr.bf16.mxu1 %v3545_v26  ;;  %v2052_v26 = vsub.s32 2, %v3895_v43 }
 0x171   :  { %1990 = vmatpush1.bf16.msra.mxu1 %v3543_v28  ;;  %v2040_v28 = vld [vmem:[%s3994_s2] sm:$0xf] }
 0x172   :  { %1991 = vmatprep.subr.bf16.mxu1 %v3548_v31  ;;  %v2019_v31 = vunpack.c.l.s4 %v3805_v29  ;;  %v2045_v33 = vrot.slane %v2040_v28, %v2044_v24  ;;  %v2053_v35 = vrot.slane %v2040_v28, %v2052_v26  ;;  %v3656_v26 = vld [vmem:[#allocation8 + $0x1e4] ss:$8 sps:$4 sm:$0xff]   ;;  %v3657_v29 = vld [vmem:[#allocation8 + $0x1f0] ss:$8 sps:$4 sm:$0xff]  }
 0x174   :  { %v2020_v37 = vunpack.c.0.s8 %v2019_v31 }
 0x175   :  { %1992 = vmatpush1.bf16.msra.mxu1 %v3546_v34  ;;  %v2049_v34 = vrot.slane %v2040_v28, %v2048_v25 }
 0x176   :  { %1993 = vmatprep.subr.bf16.mxu1 %v3551_v36  ;;  %v2057_v36 = vrot.slane %v2040_v28, %v2056_v27  ;;  %v3654_v27 = vld [vmem:[#allocation8 + $0x1e0] ss:$8 sps:$4 sm:$0xff]   ;;  %v3659_v28 = vld [vmem:[#allocation8 + $0x1f4] ss:$8 sps:$4 sm:$0xff]  }
 0x178   :  { %v2059_v38 = vcombine.low %v2053_v35, %v2057_v36  ;;  %v3674_v35 = vld [vmem:[#allocation9 + $0x78] sm:$0xff]  }
 0x179   :  { %1994 = vmatpush1.bf16.msra.mxu1 %v3549_v13  ;;  %v2058_v13 = vcombine.low %v2045_v33, %v2049_v34  ;;  %v3672_v33 = vld [vmem:[#allocation9 + $0x70] sm:$0xff]   ;;  %v3675_v36 = vld [vmem:[#allocation9 + $0x38] sm:$0xff]  }
 0x17a   :  { %1995 = vmatprep.subr.bf16.mxu1 %v3554_v39  ;;  %v2023_v39 = vsub.s32 %v2020_v37, %v3895_v43  ;;  %v3673_v34 = vld [vmem:[#allocation9 + $0x30] sm:$0xff]   ;;  %v2168_v37 = vld [vmem:[%s3996_s4] sm:$0x3] }
 0x17c   :  { %v2073_v19 = vrot.slane %v2059_v38, %v2023_v39  ;;  %v2177_v38 = vrot.slane %v2168_v37, %v2048_v25 }
 0x17d   :  { %1996 = vmatpush1.bf16.msra.mxu1 %v3552_v41  ;;  %v2066_v41 = vrot.slane %v2058_v13, %v2023_v39  ;;  %v2173_v13 = vrot.slane %v2168_v37, %v2044_v24  ;;  %v3099_v24 = vld [vmem:[%s3998_s6] ss:$0 sm:$0xff] }
 0x17e   :  { %1997 = vmatprep.subr.bf16.mxu1 %v3557_v42 }
 0x181   :  { %1998 = vmatpush1.bf16.msra.mxu1 %v3555_v3 }
 0x182   :  { %1999 = vmatprep.subr.bf16.mxu1 %v3560_v45 }
 0x185   :  { %2000 = vmatpush1.bf16.msra.mxu1 %v3558_v47  ;;  %v2074_v47 = vcombine.low %v2066_v41, %v2073_v19 }
 0x186   :  { %2001 = vmatprep.subr.bf16.mxu1 %v3563_v49 }
 0x189   :  { %2002 = vmatpush1.bf16.msra.mxu1 %v3561_v51 }
 0x18c   :  { %2004 = vmatmul.mubr.bf16.vlgmr.msra.gmra.mrb[4].mxu1 %v3932_v32 }
 0x1e0   :  { %v1841_v58 = vpop.f32.mrb[0].mxu0 }
 0x1e1   :  { %v3945_v60 = vadd.f32 %v1841_v58, %v3939_v10  ;;  %v1843_v61 = vpop.f32.mrb[1].mxu0  ;;  %v3660_v10 = vld [vmem:[#allocation9 + $0x40] sm:$0xff]  }
 0x1e2   :  { %v3948_v0 = vadd.f32 %v1843_v61, %v3941_v30  ;;  %v1845_v1 = vpop.f32.mrb[2].mxu0  ;;  %v3661_v30 = vld [vmem:[#allocation9] sm:$0xff]   ;;  %3116 = vmatprep.subr.bf16.mxu1 %v3660_v10  ;;  %v3615_v61 = vld [vmem:[#allocation8 + $0x110] ss:$8 sps:$4 sm:$0xff]  }
 0x1e3   :  { %v1846_v32 = vpop.f32.mrb[3].mxu0  ;;  %3117 = vmatpush3.bf16.msra.mxu1 %v3661_v30  ;;  %v3623_v1 = vld [vmem:[#allocation8 + $0x134] ss:$8 sps:$4 sm:$0xff]   ;;  %v3638_v10 = vld [vmem:[#allocation8 + $0x184] ss:$8 sps:$4 sm:$0xff]  }
 0x1e4   :  { %v2016_v2 = vcombine.low %v3945_v60, %v3948_v0  ;;  %3118 = vmatprep.subr.bf16.mxu1 %v3662_v11  ;;  %v3618_v0 = vld [vmem:[#allocation8 + $0x120] ss:$8 sps:$4 sm:$0xff]   ;;  %v3621_v32 = vld [vmem:[#allocation8 + $0x130] ss:$8 sps:$4 sm:$0xff]   ;;  %v3641_v11 = vld [vmem:[#allocation8 + $0x194] ss:$8 sps:$4 sm:$0xff]  }
 0x1e5   :  { %v3636_v30 = vld [vmem:[#allocation8 + $0x180] ss:$8 sps:$4 sm:$0xff]  }
 0x1e6   :  { %v2024_v45 = vrot.slane %v2016_v2, %v2023_v39  ;;  %v3626_v2 = vld [vmem:[#allocation8 + $0x144] ss:$8 sps:$4 sm:$0xff]  }
 0x1e7   :  { %3119 = vmatpush3.bf16.msra.mxu1 %v3663_v12  ;;  %v3639_v12 = vld [vmem:[#allocation8 + $0x190] ss:$8 sps:$4 sm:$0xff]  }
 0x1e8   :  { %3120 = vmatprep.subr.bf16.mxu1 %v3664_v14  ;;  %v3644_v14 = vld [vmem:[#allocation8 + $0x1a4] ss:$8 sps:$4 sm:$0xff]  }
 0x1eb   :  { %3121 = vmatpush3.bf16.msra.mxu1 %v3665_v15  ;;  %v3642_v15 = vld [vmem:[#allocation8 + $0x1a0] ss:$8 sps:$4 sm:$0xff]  }
 0x1ec   :  { %3122 = vmatprep.subr.bf16.mxu1 %v3666_v16  ;;  %v3647_v16 = vld [vmem:[#allocation8 + $0x1b4] ss:$8 sps:$4 sm:$0xff]  }
 0x1ef   :  { %3123 = vmatpush3.bf16.msra.mxu1 %v3667_v17  ;;  %v3645_v17 = vld [vmem:[#allocation8 + $0x1b0] ss:$8 sps:$4 sm:$0xff]  }
 0x1f0   :  { %3124 = vmatprep.subr.bf16.mxu1 %v3668_v18  ;;  %v3650_v18 = vld [vmem:[#allocation8 + $0x1c4] ss:$8 sps:$4 sm:$0xff]  }
 0x1f3   :  { %3125 = vmatpush3.bf16.msra.mxu1 %v3669_v20  ;;  %v3648_v20 = vld [vmem:[#allocation8 + $0x1c0] ss:$8 sps:$4 sm:$0xff]  }
 0x1f4   :  { %3126 = vmatprep.subr.bf16.mxu1 %v3670_v21  ;;  %v3653_v21 = vld [vmem:[#allocation8 + $0x1d4] ss:$8 sps:$4 sm:$0xff]  }
 0x1f7   :  { %3127 = vmatpush3.bf16.msra.mxu1 %v3671_v22  ;;  %v3651_v22 = vld [vmem:[#allocation8 + $0x1d0] ss:$8 sps:$4 sm:$0xff]  }
 0x1f8   :  { %3128 = vmatprep.subr.bf16.mxu1 %v3672_v33 }
 0x1fb   :  { %3129 = vmatpush3.bf16.msra.mxu1 %v3673_v34 }
 0x1fc   :  { %3130 = vmatprep.subr.bf16.mxu1 %v3674_v35 }
 0x1ff   :  { %3131 = vmatpush3.bf16.msra.mxu1 %v3675_v36 }
 0x25f   :  { %v2005_v40 = vpop.f32.mrb[4].mxu1 }
 0x260   :  { %v2007_v42 = vpop.f32.mrb[5].mxu1 }
 0x261   :  { %v2017_v23 = vcombine.low %v2005_v40, %v2007_v42  ;;  %v2009_v3 = vpop.f32.mrb[6].mxu1 }
 0x262   :  { %v2010_v44 = vpop.f32.mrb[7].mxu1 }
 0x263   :  { %v2031_v46 = vrot.slane %v2017_v23, %v2023_v39 }
 0x265   :  { %v2032_v48 = vcombine.low %v2024_v45, %v2031_v46 }
 0x267   :  { %v2076_v49 = vadd.f32 %v2074_v47, %v2032_v48 }
 0x269   :  { %v2077_v50 = vmax.f32 %v2076_v49, 0.0 }
 0x26b   :  { %v2086_v51 = vrot.slane %v2077_v50, %v2023_v39  ;;  %v2079_v52 = vcombine.high %v2077_v50, %v2077_v50 }
 0x26d   :  { %v2094_v53 = vcombine.high %v2086_v51, %v2086_v51  ;;  %v3964_v54 = vrot.slane %v2079_v52, %v2023_v39  ;;  %v2100_v58 = vpack.c.bf16 %v2086_v51, %v2086_v51 }
 0x26f   :  { %v2101_v55 = vpack.c.bf16 %v2094_v53, %v2094_v53  ;;  %v2095_v57 = vcombine.high %v3964_v54, %v3964_v54  ;;  %v2102_v31 = vpack.c.bf16 %v3964_v54, %v3964_v54 }
 0x271   :  { %2532 = vmatprep.mubr.bf16.mxu0 %v2101_v55  ;;  %v2103_v60 = vpack.c.bf16 %v2095_v57, %v2095_v57 }
 0x272   :  { %2533 = vmatmul.mubr.bf16.vlgmr.msra.gmra.mrb[4].mxu0 %v2100_v58 }
 0x273   :  { %2542 = vmatpush1.bf16.msra.mxu0 %v3612_v56  ;;  %2573 = vmatprep.mubr.bf16.mxu0 %v2103_v60 }
 0x274   :  { %2543 = vmatprep.subr.bf16.mxu0 %v3617_v59 }
 0x277   :  { %2544 = vmatpush1.bf16.msra.mxu0 %v3615_v61 }
 0x278   :  { %2545 = vmatprep.subr.bf16.mxu0 %v3620_v62 }
 0x27b   :  { %2546 = vmatpush1.bf16.msra.mxu0 %v3618_v0 }
 0x27c   :  { %2547 = vmatprep.subr.bf16.mxu0 %v3623_v1 }
 0x27f   :  { %2548 = vmatpush1.bf16.msra.mxu0 %v3621_v32 }
 0x280   :  { %2549 = vmatprep.subr.bf16.mxu0 %v3626_v2 }
 0x283   :  { %2550 = vmatpush1.bf16.msra.mxu0 %v3624_v4 }
 0x284   :  { %2551 = vmatprep.subr.bf16.mxu0 %v3629_v5 }
 0x287   :  { %2552 = vmatpush1.bf16.msra.mxu0 %v3627_v6 }
 0x288   :  { %2553 = vmatprep.subr.bf16.mxu0 %v3632_v7 }
 0x28b   :  { %2554 = vmatpush1.bf16.msra.mxu0 %v3630_v8 }
 0x28c   :  { %2555 = vmatprep.subr.bf16.mxu0 %v3635_v63 }
 0x28f   :  { %2556 = vmatpush1.bf16.msra.mxu0 %v3633_v9 }
 0x290   :  { %2557 = vmatprep.subr.bf16.mxu0 %v3638_v10 }
 0x293   :  { %2558 = vmatpush1.bf16.msra.mxu0 %v3636_v30 }
 0x294   :  { %2559 = vmatprep.subr.bf16.mxu0 %v3641_v11 }
 0x297   :  { %2560 = vmatpush1.bf16.msra.mxu0 %v3639_v12 }
 0x298   :  { %2561 = vmatprep.subr.bf16.mxu0 %v3644_v14 }
 0x29b   :  { %2562 = vmatpush1.bf16.msra.mxu0 %v3642_v15 }
 0x29c   :  { %2563 = vmatprep.subr.bf16.mxu0 %v3647_v16 }
 0x29f   :  { %2564 = vmatpush1.bf16.msra.mxu0 %v3645_v17 }
 0x2a0   :  { %2565 = vmatprep.subr.bf16.mxu0 %v3650_v18 }
 0x2a3   :  { %2566 = vmatpush1.bf16.msra.mxu0 %v3648_v20 }
 0x2a4   :  { %2567 = vmatprep.subr.bf16.mxu0 %v3653_v21 }
 0x2a7   :  { %2568 = vmatpush1.bf16.msra.mxu0 %v3651_v22 }
 0x2a8   :  { %2569 = vmatprep.subr.bf16.mxu0 %v3656_v26 }
 0x2ab   :  { %2570 = vmatpush1.bf16.msra.mxu0 %v3654_v27 }
 0x2ac   :  { %2571 = vmatprep.subr.bf16.mxu0 %v3659_v28 }
 0x2af   :  { %2572 = vmatpush1.bf16.msra.mxu0 %v3657_v29 }
 0x2b2   :  { %2574 = vmatmul.mubr.bf16.vlgmr.msra.gmra.mrb[4].mxu0 %v2102_v31 }
 0x385   :  { %v2575_v39 = vpop.f32.mrb[4].mxu0 }
 0x386   :  { %v3140_v40 = vadd.f32 %v2575_v39, %v2173_v13  ;;  %v2577_v41 = vpop.f32.mrb[5].mxu0 }
 0x387   :  { %v3141_v19 = vadd.f32 %v2577_v41, %v2177_v38  ;;  %v2579_v42 = vpop.f32.mrb[6].mxu0 }
 0x388   :  { %v2582_v23 = vmax.f32 %v3140_v40, 0.0  ;;  %v2580_v3 = vpop.f32.mrb[7].mxu0 }
 0x389   :  { %v2583_v44 = vmax.f32 %v3141_v19, 0.0 }
 0x38a   :  { %v2584_v46 = vpack.c.bf16 %v2582_v23, %v2582_v23 }
 0x38b   :  { %v2585_v45 = vpack.c.bf16 %v2583_v44, %v2583_v44 }
 0x38d   :  { %2753 = vmatprep.mubr.bf16.mxu1 %v2585_v45 }
 0x38e   :  { %2754 = vmatmul.mubr.bf16.vlgmr.msra.gmra.mrb[8].mxu1 %v2584_v46 }
 0x461   :  { %v3132_v47 = vpop.f32.mrb[8].mxu1 }
 0x462   :  { %v3133_v48 = vpop.f32.mrb[9].mxu1 }
 0x463   :  { %v3134_v43 = vadd.f32 %v3133_v48, %v3132_v47  ;;  %v3135_v25 = vpop.f32.mrb[10].mxu1 }
 0x464   :  { %v3136_v49 = vpop.f32.mrb[11].mxu1 }
 0x465   :  { %v2756_v50 = vadd.f32 %v3134_v43, %v3099_v24 }
 0x467   :  { %2761 = vst [vmem:[#allocation11] sm:$0x3] %v2756_v50 }
 0x468   :  { %3775 = shalt.err (!%p3772_p8)
}
 0x469   :  { %s3776_s6 = scalar_lea.hbm %s3999_s7, 32 }
 0x46a   :  { %p3777_p9 = scmp.ne.s32.totalorder %s3999_s7, %s3776_s6  ;;  %p3780_p10 = scmp.lt.u32.totalorder %s3776_s6, %s3999_s7 }
 0x46c   :  { %p3782_p11 = pnand %p3780_p10, %p3777_p9 }
 0x46e   :  { %3785 = shalt.err (!%p3782_p11)
}
 0x46f   :  { %2771 = dma.vmem_to_hbm [thread:$0]  %s2769_s9, 32, %s3999_s7, [#allocation5]  }
 0x470   :  { %3792 = dma.done.wait [#allocation5], 32  }
 0x471   :  { %3793 = vsyncadd [#allocation5], 4294967264 }
 0x472   :  { %2775 = vsyncpa [#allocation4], 1 }
 0x473   :  { %2776 = vsyncpa [#allocation7], 1 }
 0x474   :  { %2777 = vsyncpa [#allocation10], 1 }
 0x475   :  { %2778 = vsyncpa [#allocation5], 1 }

</bundles_post_ra>
